<compile_context>
chip_gen: v7x
topology: tpu7x:2x2x1
jax: 0.10.0
libtpu: 0.0.40
codegen_flags: <defaults>
</compile_context>

<pallas_src>
import jax
import jax.numpy as jnp
from jax.experimental import pallas as pl
from jax.experimental.pallas import tpu as pltpu

_SUBLANE = 8

# Current jax exposes pltpu.CompilerParams; keep a fallback for older wheels.
_CP = getattr(pltpu, "CompilerParams", None) or getattr(pltpu, "TPUCompilerParams", None)


def _round_up(n, m):
    return ((n + m - 1) // m) * m


# ----------------------------------------------------------------------------
# Pallas kernel: all coupling layers + rotations for one batch tile.
# Every array inside is feature-major: (features, TB) with batch on lanes.
# ----------------------------------------------------------------------------
def _realnvp_kernel(xl_ref, xu_ref, c_ref,
                    w1_ref, w1c_ref, b1_ref,
                    w2_ref, b2_ref,
                    w3_ref, b3_ref,
                    rll_ref, rlu_ref, rul_ref, ruu_ref,
                    inter_ref, z_ref):
    blocks = w1_ref.shape[0]
    dt = xl_ref.shape[0]                 # lower-half width  (D_tilde)
    d_out = xu_ref.shape[0]              # upper-half width
    sh = w3_ref.shape[1] // 2            # sublane offset of the scaling rows
    mm = w1_ref.dtype                    # matmul-operand dtype (f32 or bf16)
    f32 = jnp.float32

    zl = xl_ref[...]                     # (Dt, TB)  f32
    zu = xu_ref[...]                     # (Do, TB)  f32
    cond = c_ref[...]                    # (1,  TB)  f32

    # Static unroll: blocks is small (3 here).
    # TODO(synk): if blocks grows beyond ~8, move this loop onto an
    # "arbitrary" grid axis with zl/zu carried in VMEM scratch.
    for i in range(blocks):
        if i > 0:
            # intermediates[i] = z entering block i, stored feature-major so
            # the store is lane-dense.  Block 0's intermediate is exactly x
            # and is returned by the wrapper without a redundant store.
            inter_ref[i - 1, :dt, :] = zl
            inter_ref[i - 1, dt:, :] = zu

        # Fused layer 1 for [translation ; scaling]; the K=1 condition column
        # is a VPU broadcast fma, not an MXU matmul.
        h1 = jnp.maximum(
            jnp.dot(w1_ref[i], zl.astype(mm), preferred_element_type=f32)
            + w1c_ref[i] * cond + b1_ref[i], 0.0)                    # (2H, TB)

        # Fused layer 2: block-diagonal [[tW2, 0], [0, sW2]].
        # TODO(synk): on v5e split into two H-wide dots if 2H ever exceeds 128.
        h2 = jnp.maximum(
            jnp.dot(w2_ref[i], h1.astype(mm), preferred_element_type=f32)
            + b2_ref[i], 0.0)                                        # (2H, TB)

        # Fused layer 3, padded so translation rows [0, sh) and scaling rows
        # [sh, 2sh) both start on a sublane-tile boundary -> cheap slices.
        out3 = (jnp.dot(w3_ref[i], h2.astype(mm), preferred_element_type=f32)
                + b3_ref[i])                                         # (2sh, TB)
        trans = out3[:d_out, :]
        scale = jnp.exp(jnp.tanh(out3[sh:sh + d_out, :]))
        zu_new = zu * scale + trans                                  # coupling

        if i != blocks - 1:
            # Rotation z' = R @ z, with R pre-split into quadrants on the host
            # so there is no in-kernel sublane slicing or concatenation.
            zl_mm = zl.astype(mm)
            zu_mm = zu_new.astype(mm)
            zl = (jnp.dot(rll_ref[i], zl_mm, preferred_element_type=f32)
                  + jnp.dot(rlu_ref[i], zu_mm, preferred_element_type=f32))
            zu = (jnp.dot(rul_ref[i], zl_mm, preferred_element_type=f32)
                  + jnp.dot(ruu_ref[i], zu_mm, preferred_element_type=f32))
        else:
            zu = zu_new

    # Final z, feature-major (lane axis = batch) -> lane-dense stores.
    z_ref[:dt, :] = zl
    z_ref[dt:, :] = zu


# ----------------------------------------------------------------------------
# Host-side weight packing (feature-major, fused, padded, pre-split).
# ----------------------------------------------------------------------------
def prepare_fused_params(params, *, blocks, data_dim, hidden, condition_size,
                         matmul_dtype=jnp.float32):
    assert condition_size == 1, "forward() appends exactly one condition column"
    dt = data_dim // 2
    d_out = data_dim - dt
    sh = _round_up(d_out, _SUBLANE)       # scaling rows start here (8-aligned)

    w1s, w1cs, b1s, w2s, b2s, w3s, b3s = ([] for _ in range(7))
    zH = jnp.zeros((hidden, hidden), jnp.float32)
    for p in params["layers"]:
        # Layer 1 fused over [translation ; scaling], stored (out, in).
        w1_full = jnp.concatenate([p["tw1"], p["sw1"]], axis=1).T    # (2H, Dt+1)
        w1s.append(w1_full[:, :dt])                                  # (2H, Dt)
        w1cs.append(w1_full[:, dt:])                                 # (2H, 1) cond col
        b1s.append(jnp.concatenate([p["tb1"], p["sb1"]], axis=1).T)  # (2H, 1)
        # Layer 2: block-diagonal (2H, 2H).
        w2s.append(jnp.block([[p["tw2"].T, zH], [zH, p["sw2"].T]]))
        b2s.append(jnp.concatenate([p["tb2"], p["sb2"]], axis=1).T)
        # Layer 3: fused + sublane-padded (trans rows [0,sh), scale rows [sh,2sh)).
        w3p = jnp.zeros((2 * sh, 2 * hidden), jnp.float32)
        w3p = w3p.at[:d_out, :hidden].set(p["tw3"].T)
        w3p = w3p.at[sh:sh + d_out, hidden:].set(p["sw3"].T)
        b3p = jnp.zeros((2 * sh, 1), jnp.float32)
        b3p = b3p.at[:d_out, :].set(p["tb3"].T)
        b3p = b3p.at[sh:sh + d_out, :].set(p["sb3"].T)
        w3s.append(w3p)
        b3s.append(b3p)

    # Rotations pre-split into quadrants of R (z' = R @ z in feature-major).
    if blocks > 1:
        rot = jnp.stack(params["rot"], axis=0)                 # (blocks-1, D, D)
    else:
        rot = jnp.eye(data_dim, dtype=jnp.float32)[None]       # dummy, never read
    rll = rot[:, :dt, :dt]
    rlu = rot[:, :dt, dt:]
    rul = rot[:, dt:, :dt]
    ruu = rot[:, dt:, dt:]

    mm = matmul_dtype
    return dict(
        w1=jnp.stack(w1s).astype(mm), w1c=jnp.stack(w1cs), b1=jnp.stack(b1s),
        w2=jnp.stack(w2s).astype(mm), b2=jnp.stack(b2s),
        w3=jnp.stack(w3s).astype(mm), b3=jnp.stack(b3s),
        rll=rll.astype(mm), rlu=rlu.astype(mm),
        rul=rul.astype(mm), ruu=ruu.astype(mm))


# ----------------------------------------------------------------------------
# Wrapper: batch-tiled pallas_call; restores the PyTorch (B, D) layout.
# ----------------------------------------------------------------------------
def realnvp_forward(x, condition, fused, *, blocks, data_dim, max_batch_tile=512):
    """Returns (intermediates list, z), matching the PyTorch forward."""
    B, D = x.shape
    assert D == data_dim
    assert max_batch_tile % 128 == 0
    dt = data_dim // 2
    d_out = data_dim - dt
    n_inter = max(blocks - 1, 1)

    # Batch tile: large enough to fill the MXU, lane-aligned when tiled.
    tb = min(max_batch_tile, _round_up(B, _SUBLANE))
    b_pad = _round_up(B, tb)

    # Feature-major inputs (lane axis = batch), zero-padded to the tile.
    x_t = x.astype(jnp.float32).T                                   # (D, B)
    cond_t = condition.astype(jnp.float32).reshape(1, B)            # unsqueeze(1)
    if b_pad != B:
        x_t = jnp.pad(x_t, ((0, 0), (0, b_pad - B)))
        cond_t = jnp.pad(cond_t, ((0, 0), (0, b_pad - B)))
    xl_t, xu_t = x_t[:dt], x_t[dt:]

    col = lambda h: pl.BlockSpec((h, tb), lambda b: (0, b))
    resident = lambda a: pl.BlockSpec(a.shape, lambda b: (0,) * a.ndim)

    weights = (fused["w1"], fused["w1c"], fused["b1"],
               fused["w2"], fused["b2"], fused["w3"], fused["b3"],
               fused["rll"], fused["rlu"], fused["rul"], fused["ruu"])

    inter_t, z_t = pl.pallas_call(
        _realnvp_kernel,
        grid=(b_pad // tb,),
        in_specs=[col(dt), col(d_out), col(1)] + [resident(w) for w in weights],
        out_specs=(pl.BlockSpec((n_inter, D, tb), lambda b: (0, 0, b)),
                   pl.BlockSpec((D, tb), lambda b: (0, b))),
        out_shape=(jax.ShapeDtypeStruct((n_inter, D, b_pad), jnp.float32),
                   jax.ShapeDtypeStruct((D, b_pad), jnp.float32)),
        compiler_params=_CP(
            dimension_semantics=("parallel",),        # v7x: 2 TCs split the batch
            vmem_limit_bytes=32 * 1024 * 1024),
    )(xl_t, xu_t, cond_t, *weights)

    # Layout plumbing back to the PyTorch (B, D) convention.  x itself is
    # intermediates[0] (no redundant kernel store / HBM writeback).
    z = z_t[:, :B].T
    intermediates = [x]
    if blocks > 1:
        inter_b = jnp.transpose(inter_t[:, :, :B], (0, 2, 1))       # (blocks-1, B, D)
        intermediates += [inter_b[i] for i in range(blocks - 1)]
    return intermediates, z


# ----------------------------------------------------------------------------
# Deterministic parameter init (PyTorch nn.Linear-style uniform), stored in
# the x @ W + b convention: W (in, out), b (1, out).
# ----------------------------------------------------------------------------
def _init_linear(key, fan_in, fan_out):
    kw, kb = jax.random.split(key)
    bound = 1.0 / (fan_in ** 0.5)
    w = jax.random.uniform(kw, (fan_in, fan_out), jnp.float32, -bound, bound)
    b = jax.random.uniform(kb, (1, fan_out), jnp.float32, -bound, bound)
    return w, b


def init_realnvp_params(key, data_dim, hidden, blocks, condition_size):
    dt = data_dim // 2
    d_out = data_dim - dt
    layers = []
    for _ in range(blocks):
        key, *ks = jax.random.split(key, 7)
        tw1, tb1 = _init_linear(ks[0], dt + condition_size, hidden)
        tw2, tb2 = _init_linear(ks[1], hidden, hidden)
        tw3, tb3 = _init_linear(ks[2], hidden, d_out)
        sw1, sb1 = _init_linear(ks[3], dt + condition_size, hidden)
        sw2, sb2 = _init_linear(ks[4], hidden, hidden)
        sw3, sb3 = _init_linear(ks[5], hidden, d_out)
        layers.append(dict(tw1=tw1, tb1=tb1, tw2=tw2, tb2=tb2, tw3=tw3, tb3=tb3,
                           sw1=sw1, sb1=sb1, sw2=sw2, sb2=sb2, sw3=sw3, sb3=sb3))
    rots = []
    for _ in range(blocks - 1):
        key, kr = jax.random.split(key)
        a = jax.random.normal(kr, (data_dim, data_dim), jnp.float32)
        q, _ = jnp.linalg.qr(a)                    # random rotation matrix
        rots.append(q.astype(jnp.float32))
    return dict(layers=layers, rot=rots)


# ----------------------------------------------------------------------------
# Pure-JAX reference (mirrors the PyTorch forward) for correctness checking.
# ----------------------------------------------------------------------------
def _ref_forward(x, condition, params, *, blocks, data_dim):
    dt = data_dim // 2
    cond2d = condition[:, None].astype(jnp.float32)
    z = x
    intermediates = []
    for i in range(blocks):
        intermediates.append(z)
        p = params["layers"][i]
        lower, upper = z[:, :dt], z[:, dt:]
        inp = jnp.concatenate([lower, cond2d], axis=1)

        def mlp(w1, b1, w2, b2, w3, b3):
            h1 = jax.nn.relu(inp @ w1 + b1)
            h2 = jax.nn.relu(h1 @ w2 + b2)
            return h2 @ w3 + b3

        t = mlp(p["tw1"], p["tb1"], p["tw2"], p["tb2"], p["tw3"], p["tb3"])
        s = jnp.exp(jnp.tanh(
            mlp(p["sw1"], p["sb1"], p["sw2"], p["sb2"], p["sw3"], p["sb3"])))
        z = jnp.concatenate([lower, upper * s + t], axis=1)
        if i != blocks - 1:
            z = jnp.einsum('ij,bj->bi', params["rot"][i], z)
    return intermediates, z


# TODO(synk): reverse(), get_codes(), get_reconstructions() and sample() are
# host-side inference/sampling utilities (DataLoader loops, matrix inverse);
# only the forward pass is implemented as a Pallas kernel.

if __name__ == "__main__":
    BATCH = 8
    DATA_DIM = 8          # input_size
    HIDDEN = 32           # hidden_size
    BLOCKS = 3
    CONDITION_SIZE = 1    # forward concatenates condition.unsqueeze(1): 1 column

    root = jax.random.PRNGKey(0)
    k_param, k_x, k_c = jax.random.split(root, 3)

    params = init_realnvp_params(k_param, DATA_DIM, HIDDEN, BLOCKS, CONDITION_SIZE)
    x = jax.random.normal(k_x, (BATCH, DATA_DIM), jnp.float32)
    condition = jax.random.randint(k_c, (BATCH,), 0, 4).astype(jnp.float32)

    ref_inters, ref_z = _ref_forward(
        x, condition, params, blocks=BLOCKS, data_dim=DATA_DIM)

    # --- f32 MXU-operand path (exact vs. reference) ------------------------
    fused32 = prepare_fused_params(params, blocks=BLOCKS, data_dim=DATA_DIM,
                                   hidden=HIDDEN, condition_size=CONDITION_SIZE)
    inters, z = realnvp_forward(x, condition, fused32,
                                blocks=BLOCKS, data_dim=DATA_DIM)
    z = jax.block_until_ready(z)
    inters = [jax.block_until_ready(t) for t in inters]
    assert len(inters) == BLOCKS
    for a, b in zip(inters, ref_inters):
        assert jnp.allclose(a, b, atol=1e-4, rtol=1e-4)
    assert jnp.allclose(z, ref_z, atol=1e-4, rtol=1e-4)

    # --- bf16 MXU-operand path (v6e/v7x fast path; f32 accumulate) ---------
    fused16 = prepare_fused_params(params, blocks=BLOCKS, data_dim=DATA_DIM,
                                   hidden=HIDDEN, condition_size=CONDITION_SIZE,
                                   matmul_dtype=jnp.bfloat16)
    _, z16 = realnvp_forward(x, condition, fused16,
                             blocks=BLOCKS, data_dim=DATA_DIM)
    z16 = jax.block_until_ready(z16)
    assert jnp.allclose(z16, ref_z, atol=1e-1, rtol=1e-1)

    print("KERNEL_OK")
</pallas_src>

<mosaic_0001>
module attributes {stable_mosaic.version = 11 : i64} {
  func.func @_realnvp_kernel(%arg0: i32, %arg1: memref<4x8xf32, #tpu.memory_space<vmem>>, %arg2: memref<4x8xf32, #tpu.memory_space<vmem>>, %arg3: memref<1x8xf32, #tpu.memory_space<vmem>>, %arg4: memref<3x64x4xf32, #tpu.memory_space<vmem>>, %arg5: memref<3x64x1xf32, #tpu.memory_space<vmem>>, %arg6: memref<3x64x1xf32, #tpu.memory_space<vmem>>, %arg7: memref<3x64x64xf32, #tpu.memory_space<vmem>>, %arg8: memref<3x64x1xf32, #tpu.memory_space<vmem>>, %arg9: memref<3x16x64xf32, #tpu.memory_space<vmem>>, %arg10: memref<3x16x1xf32, #tpu.memory_space<vmem>>, %arg11: memref<2x4x4xf32, #tpu.memory_space<vmem>>, %arg12: memref<2x4x4xf32, #tpu.memory_space<vmem>>, %arg13: memref<2x4x4xf32, #tpu.memory_space<vmem>>, %arg14: memref<2x4x4xf32, #tpu.memory_space<vmem>>, %arg15: memref<2x8x8xf32, #tpu.memory_space<vmem>>, %arg16: memref<8x8xf32, #tpu.memory_space<vmem>>) attributes {dimension_semantics = [#tpu.dimension_semantics<parallel>], iteration_bounds = array<i64: 1>, scalar_prefetch = 0 : i64, scratch_operands = 0 : i64, tpu.core_type = #tpu.core_type<tc>, window_params = [{transform_indices = @transform_0, window_bounds = array<i64: 4, 8>}, {transform_indices = @transform_1, window_bounds = array<i64: 4, 8>}, {transform_indices = @transform_2, window_bounds = array<i64: 1, 8>}, {pipeline_mode = #tpu.pipeline_mode<synchronous>, transform_indices = @transform_3, window_bounds = array<i64: 3, 64, 4>}, {pipeline_mode = #tpu.pipeline_mode<synchronous>, transform_indices = @transform_4, window_bounds = array<i64: 3, 64, 1>}, {pipeline_mode = #tpu.pipeline_mode<synchronous>, transform_indices = @transform_5, window_bounds = array<i64: 3, 64, 1>}, {pipeline_mode = #tpu.pipeline_mode<synchronous>, transform_indices = @transform_6, window_bounds = array<i64: 3, 64, 64>}, {pipeline_mode = #tpu.pipeline_mode<synchronous>, transform_indices = @transform_7, window_bounds = array<i64: 3, 64, 1>}, {pipeline_mode = #tpu.pipeline_mode<synchronous>, transform_indices = @transform_8, window_bounds = array<i64: 3, 16, 64>}, {pipeline_mode = #tpu.pipeline_mode<synchronous>, transform_indices = @transform_9, window_bounds = array<i64: 3, 16, 1>}, {pipeline_mode = #tpu.pipeline_mode<synchronous>, transform_indices = @transform_10, window_bounds = array<i64: 2, 4, 4>}, {pipeline_mode = #tpu.pipeline_mode<synchronous>, transform_indices = @transform_11, window_bounds = array<i64: 2, 4, 4>}, {pipeline_mode = #tpu.pipeline_mode<synchronous>, transform_indices = @transform_12, window_bounds = array<i64: 2, 4, 4>}, {pipeline_mode = #tpu.pipeline_mode<synchronous>, transform_indices = @transform_13, window_bounds = array<i64: 2, 4, 4>}, {transform_indices = @transform_14, window_bounds = array<i64: 2, 8, 8>}, {transform_indices = @transform_15, window_bounds = array<i64: 8, 8>}]} {
    %c0 = arith.constant 0 : index
    %c0_0 = arith.constant 0 : index
    %0 = vector.load %arg1[%c0, %c0_0] : memref<4x8xf32, #tpu.memory_space<vmem>>, vector<4x8xf32>
    %c0_1 = arith.constant 0 : index
    %c0_2 = arith.constant 0 : index
    %1 = vector.load %arg2[%c0_1, %c0_2] : memref<4x8xf32, #tpu.memory_space<vmem>>, vector<4x8xf32>
    %c0_3 = arith.constant 0 : index
    %c0_4 = arith.constant 0 : index
    %2 = vector.load %arg3[%c0_3, %c0_4] : memref<1x8xf32, #tpu.memory_space<vmem>>, vector<1x8xf32>
    %c0_5 = arith.constant 0 : index
    %c0_6 = arith.constant 0 : index
    %c0_7 = arith.constant 0 : index
    %3 = vector.load %arg4[%c0_5, %c0_6, %c0_7] : memref<3x64x4xf32, #tpu.memory_space<vmem>>, vector<1x64x4xf32>
    %4 = vector.shape_cast %3 : vector<1x64x4xf32> to vector<64x4xf32>
    %cst = arith.constant dense<0.000000e+00> : vector<64x8xf32>
    %5 = tpu.matmul %4, %0, %cst {dimension_numbers = #tpu.dot_dimension_numbers<[1], [0], [0], [1], [0, 0, 1, 1], [], []>} : vector<64x4xf32>, vector<4x8xf32>, vector<64x8xf32> -> vector<64x8xf32>
    %c0_8 = arith.constant 0 : index
    %c0_9 = arith.constant 0 : index
    %c0_10 = arith.constant 0 : index
    %6 = vector.load %arg5[%c0_8, %c0_9, %c0_10] : memref<3x64x1xf32, #tpu.memory_space<vmem>>, vector<1x64x1xf32>
    %7 = vector.shape_cast %6 : vector<1x64x1xf32> to vector<64x1xf32>
    %8 = vector.broadcast %7 : vector<64x1xf32> to vector<64x8xf32>
    %9 = vector.broadcast %2 : vector<1x8xf32> to vector<64x8xf32>
    %10 = arith.mulf %8, %9 : vector<64x8xf32>
    %11 = arith.addf %5, %10 : vector<64x8xf32>
    %c0_11 = arith.constant 0 : index
    %c0_12 = arith.constant 0 : index
    %c0_13 = arith.constant 0 : index
    %12 = vector.load %arg6[%c0_11, %c0_12, %c0_13] : memref<3x64x1xf32, #tpu.memory_space<vmem>>, vector<1x64x1xf32>
    %13 = vector.shape_cast %12 : vector<1x64x1xf32> to vector<64x1xf32>
    %14 = vector.broadcast %13 : vector<64x1xf32> to vector<64x8xf32>
    %15 = arith.addf %11, %14 : vector<64x8xf32>
    %cst_14 = arith.constant 0.000000e+00 : f32
    %16 = vector.broadcast %cst_14 : f32 to vector<64x8xf32>
    %17 = arith.maximumf %15, %16 : vector<64x8xf32>
    %c0_15 = arith.constant 0 : index
    %c0_16 = arith.constant 0 : index
    %c0_17 = arith.constant 0 : index
    %18 = vector.load %arg7[%c0_15, %c0_16, %c0_17] : memref<3x64x64xf32, #tpu.memory_space<vmem>>, vector<1x64x64xf32>
    %19 = vector.shape_cast %18 : vector<1x64x64xf32> to vector<64x64xf32>
    %cst_18 = arith.constant dense<0.000000e+00> : vector<64x8xf32>
    %20 = tpu.matmul %19, %17, %cst_18 {dimension_numbers = #tpu.dot_dimension_numbers<[1], [0], [0], [1], [0, 0, 1, 1], [], []>} : vector<64x64xf32>, vector<64x8xf32>, vector<64x8xf32> -> vector<64x8xf32>
    %c0_19 = arith.constant 0 : index
    %c0_20 = arith.constant 0 : index
    %c0_21 = arith.constant 0 : index
    %21 = vector.load %arg8[%c0_19, %c0_20, %c0_21] : memref<3x64x1xf32, #tpu.memory_space<vmem>>, vector<1x64x1xf32>
    %22 = vector.shape_cast %21 : vector<1x64x1xf32> to vector<64x1xf32>
    %23 = vector.broadcast %22 : vector<64x1xf32> to vector<64x8xf32>
    %24 = arith.addf %20, %23 : vector<64x8xf32>
    %cst_22 = arith.constant 0.000000e+00 : f32
    %25 = vector.broadcast %cst_22 : f32 to vector<64x8xf32>
    %26 = arith.maximumf %24, %25 : vector<64x8xf32>
    %c0_23 = arith.constant 0 : index
    %c0_24 = arith.constant 0 : index
    %c0_25 = arith.constant 0 : index
    %27 = vector.load %arg9[%c0_23, %c0_24, %c0_25] : memref<3x16x64xf32, #tpu.memory_space<vmem>>, vector<1x16x64xf32>
    %28 = vector.shape_cast %27 : vector<1x16x64xf32> to vector<16x64xf32>
    %cst_26 = arith.constant dense<0.000000e+00> : vector<16x8xf32>
    %29 = tpu.matmul %28, %26, %cst_26 {dimension_numbers = #tpu.dot_dimension_numbers<[1], [0], [0], [1], [0, 0, 1, 1], [], []>} : vector<16x64xf32>, vector<64x8xf32>, vector<16x8xf32> -> vector<16x8xf32>
    %c0_27 = arith.constant 0 : index
    %c0_28 = arith.constant 0 : index
    %c0_29 = arith.constant 0 : index
    %30 = vector.load %arg10[%c0_27, %c0_28, %c0_29] : memref<3x16x1xf32, #tpu.memory_space<vmem>>, vector<1x16x1xf32>
    %31 = vector.shape_cast %30 : vector<1x16x1xf32> to vector<16x1xf32>
    %32 = vector.broadcast %31 : vector<16x1xf32> to vector<16x8xf32>
    %33 = arith.addf %29, %32 : vector<16x8xf32>
    %34 = vector.extract_strided_slice %33 {offsets = [0, 0], sizes = [4, 8], strides = [1, 1]} : vector<16x8xf32> to vector<4x8xf32>
    %35 = vector.extract_strided_slice %33 {offsets = [8, 0], sizes = [4, 8], strides = [1, 1]} : vector<16x8xf32> to vector<4x8xf32>
    %36 = math.tanh %35 : vector<4x8xf32>
    %37 = math.exp %36 : vector<4x8xf32>
    %38 = arith.mulf %1, %37 : vector<4x8xf32>
    %39 = arith.addf %38, %34 : vector<4x8xf32>
    %c0_30 = arith.constant 0 : index
    %c0_31 = arith.constant 0 : index
    %c0_32 = arith.constant 0 : index
    %40 = vector.load %arg11[%c0_30, %c0_31, %c0_32] : memref<2x4x4xf32, #tpu.memory_space<vmem>>, vector<1x4x4xf32>
    %41 = vector.shape_cast %40 : vector<1x4x4xf32> to vector<4x4xf32>
    %cst_33 = arith.constant dense<0.000000e+00> : vector<4x8xf32>
    %42 = tpu.matmul %41, %0, %cst_33 {dimension_numbers = #tpu.dot_dimension_numbers<[1], [0], [0], [1], [0, 0, 1, 1], [], []>} : vector<4x4xf32>, vector<4x8xf32>, vector<4x8xf32> -> vector<4x8xf32>
    %c0_34 = arith.constant 0 : index
    %c0_35 = arith.constant 0 : index
    %c0_36 = arith.constant 0 : index
    %43 = vector.load %arg12[%c0_34, %c0_35, %c0_36] : memref<2x4x4xf32, #tpu.memory_space<vmem>>, vector<1x4x4xf32>
    %44 = vector.shape_cast %43 : vector<1x4x4xf32> to vector<4x4xf32>
    %cst_37 = arith.constant dense<0.000000e+00> : vector<4x8xf32>
    %45 = tpu.matmul %44, %39, %cst_37 {dimension_numbers = #tpu.dot_dimension_numbers<[1], [0], [0], [1], [0, 0, 1, 1], [], []>} : vector<4x4xf32>, vector<4x8xf32>, vector<4x8xf32> -> vector<4x8xf32>
    %46 = arith.addf %42, %45 : vector<4x8xf32>
    %c0_38 = arith.constant 0 : index
    %c0_39 = arith.constant 0 : index
    %c0_40 = arith.constant 0 : index
    %47 = vector.load %arg13[%c0_38, %c0_39, %c0_40] : memref<2x4x4xf32, #tpu.memory_space<vmem>>, vector<1x4x4xf32>
    %48 = vector.shape_cast %47 : vector<1x4x4xf32> to vector<4x4xf32>
    %cst_41 = arith.constant dense<0.000000e+00> : vector<4x8xf32>
    %49 = tpu.matmul %48, %0, %cst_41 {dimension_numbers = #tpu.dot_dimension_numbers<[1], [0], [0], [1], [0, 0, 1, 1], [], []>} : vector<4x4xf32>, vector<4x8xf32>, vector<4x8xf32> -> vector<4x8xf32>
    %c0_42 = arith.constant 0 : index
    %c0_43 = arith.constant 0 : index
    %c0_44 = arith.constant 0 : index
    %50 = vector.load %arg14[%c0_42, %c0_43, %c0_44] : memref<2x4x4xf32, #tpu.memory_space<vmem>>, vector<1x4x4xf32>
    %51 = vector.shape_cast %50 : vector<1x4x4xf32> to vector<4x4xf32>
    %cst_45 = arith.constant dense<0.000000e+00> : vector<4x8xf32>
    %52 = tpu.matmul %51, %39, %cst_45 {dimension_numbers = #tpu.dot_dimension_numbers<[1], [0], [0], [1], [0, 0, 1, 1], [], []>} : vector<4x4xf32>, vector<4x8xf32>, vector<4x8xf32> -> vector<4x8xf32>
    %53 = arith.addf %49, %52 : vector<4x8xf32>
    %c0_46 = arith.constant 0 : index
    %c0_47 = arith.constant 0 : index
    %c0_48 = arith.constant 0 : index
    %54 = vector.load %arg15[%c0_46, %c0_47, %c0_48] : memref<2x8x8xf32, #tpu.memory_space<vmem>>, vector<1x4x8xf32>
    %55 = vector.shape_cast %54 : vector<1x4x8xf32> to vector<4x8xf32>
    %56 = vector.shape_cast %46 : vector<4x8xf32> to vector<1x4x8xf32>
    tpu.vector_store %arg15[%c0_46, %c0_47, %c0_48], %56 {strides = array<i32>} : memref<2x8x8xf32, #tpu.memory_space<vmem>>, vector<1x4x8xf32>,
    %c0_49 = arith.constant 0 : index
    %c4 = arith.constant 4 : index
    %c0_50 = arith.constant 0 : index
    %57 = vector.load %arg15[%c0_49, %c4, %c0_50] : memref<2x8x8xf32, #tpu.memory_space<vmem>>, vector<1x4x8xf32>
    %58 = vector.shape_cast %57 : vector<1x4x8xf32> to vector<4x8xf32>
    %59 = vector.shape_cast %53 : vector<4x8xf32> to vector<1x4x8xf32>
    tpu.vector_store %arg15[%c0_49, %c4, %c0_50], %59 {strides = array<i32>} : memref<2x8x8xf32, #tpu.memory_space<vmem>>, vector<1x4x8xf32>,
    %c1 = arith.constant 1 : index
    %c0_51 = arith.constant 0 : index
    %c0_52 = arith.constant 0 : index
    %60 = vector.load %arg4[%c1, %c0_51, %c0_52] : memref<3x64x4xf32, #tpu.memory_space<vmem>>, vector<1x64x4xf32>
    %61 = vector.shape_cast %60 : vector<1x64x4xf32> to vector<64x4xf32>
    %cst_53 = arith.constant dense<0.000000e+00> : vector<64x8xf32>
    %62 = tpu.matmul %61, %46, %cst_53 {dimension_numbers = #tpu.dot_dimension_numbers<[1], [0], [0], [1], [0, 0, 1, 1], [], []>} : vector<64x4xf32>, vector<4x8xf32>, vector<64x8xf32> -> vector<64x8xf32>
    %c1_54 = arith.constant 1 : index
    %c0_55 = arith.constant 0 : index
    %c0_56 = arith.constant 0 : index
    %63 = vector.load %arg5[%c1_54, %c0_55, %c0_56] : memref<3x64x1xf32, #tpu.memory_space<vmem>>, vector<1x64x1xf32>
    %64 = vector.shape_cast %63 : vector<1x64x1xf32> to vector<64x1xf32>
    %65 = vector.broadcast %64 : vector<64x1xf32> to vector<64x8xf32>
    %66 = vector.broadcast %2 : vector<1x8xf32> to vector<64x8xf32>
    %67 = arith.mulf %65, %66 : vector<64x8xf32>
    %68 = arith.addf %62, %67 : vector<64x8xf32>
    %c1_57 = arith.constant 1 : index
    %c0_58 = arith.constant 0 : index
    %c0_59 = arith.constant 0 : index
    %69 = vector.load %arg6[%c1_57, %c0_58, %c0_59] : memref<3x64x1xf32, #tpu.memory_space<vmem>>, vector<1x64x1xf32>
    %70 = vector.shape_cast %69 : vector<1x64x1xf32> to vector<64x1xf32>
    %71 = vector.broadcast %70 : vector<64x1xf32> to vector<64x8xf32>
    %72 = arith.addf %68, %71 : vector<64x8xf32>
    %cst_60 = arith.constant 0.000000e+00 : f32
    %73 = vector.broadcast %cst_60 : f32 to vector<64x8xf32>
    %74 = arith.maximumf %72, %73 : vector<64x8xf32>
    %c1_61 = arith.constant 1 : index
    %c0_62 = arith.constant 0 : index
    %c0_63 = arith.constant 0 : index
    %75 = vector.load %arg7[%c1_61, %c0_62, %c0_63] : memref<3x64x64xf32, #tpu.memory_space<vmem>>, vector<1x64x64xf32>
    %76 = vector.shape_cast %75 : vector<1x64x64xf32> to vector<64x64xf32>
    %cst_64 = arith.constant dense<0.000000e+00> : vector<64x8xf32>
    %77 = tpu.matmul %76, %74, %cst_64 {dimension_numbers = #tpu.dot_dimension_numbers<[1], [0], [0], [1], [0, 0, 1, 1], [], []>} : vector<64x64xf32>, vector<64x8xf32>, vector<64x8xf32> -> vector<64x8xf32>
    %c1_65 = arith.constant 1 : index
    %c0_66 = arith.constant 0 : index
    %c0_67 = arith.constant 0 : index
    %78 = vector.load %arg8[%c1_65, %c0_66, %c0_67] : memref<3x64x1xf32, #tpu.memory_space<vmem>>, vector<1x64x1xf32>
    %79 = vector.shape_cast %78 : vector<1x64x1xf32> to vector<64x1xf32>
    %80 = vector.broadcast %79 : vector<64x1xf32> to vector<64x8xf32>
    %81 = arith.addf %77, %80 : vector<64x8xf32>
    %cst_68 = arith.constant 0.000000e+00 : f32
    %82 = vector.broadcast %cst_68 : f32 to vector<64x8xf32>
    %83 = arith.maximumf %81, %82 : vector<64x8xf32>
    %c1_69 = arith.constant 1 : index
    %c0_70 = arith.constant 0 : index
    %c0_71 = arith.constant 0 : index
    %84 = vector.load %arg9[%c1_69, %c0_70, %c0_71] : memref<3x16x64xf32, #tpu.memory_space<vmem>>, vector<1x16x64xf32>
    %85 = vector.shape_cast %84 : vector<1x16x64xf32> to vector<16x64xf32>
    %cst_72 = arith.constant dense<0.000000e+00> : vector<16x8xf32>
    %86 = tpu.matmul %85, %83, %cst_72 {dimension_numbers = #tpu.dot_dimension_numbers<[1], [0], [0], [1], [0, 0, 1, 1], [], []>} : vector<16x64xf32>, vector<64x8xf32>, vector<16x8xf32> -> vector<16x8xf32>
    %c1_73 = arith.constant 1 : index
    %c0_74 = arith.constant 0 : index
    %c0_75 = arith.constant 0 : index
    %87 = vector.load %arg10[%c1_73, %c0_74, %c0_75] : memref<3x16x1xf32, #tpu.memory_space<vmem>>, vector<1x16x1xf32>
    %88 = vector.shape_cast %87 : vector<1x16x1xf32> to vector<16x1xf32>
    %89 = vector.broadcast %88 : vector<16x1xf32> to vector<16x8xf32>
    %90 = arith.addf %86, %89 : vector<16x8xf32>
    %91 = vector.extract_strided_slice %90 {offsets = [0, 0], sizes = [4, 8], strides = [1, 1]} : vector<16x8xf32> to vector<4x8xf32>
    %92 = vector.extract_strided_slice %90 {offsets = [8, 0], sizes = [4, 8], strides = [1, 1]} : vector<16x8xf32> to vector<4x8xf32>
    %93 = math.tanh %92 : vector<4x8xf32>
    %94 = math.exp %93 : vector<4x8xf32>
    %95 = arith.mulf %53, %94 : vector<4x8xf32>
    %96 = arith.addf %95, %91 : vector<4x8xf32>
    %c1_76 = arith.constant 1 : index
    %c0_77 = arith.constant 0 : index
    %c0_78 = arith.constant 0 : index
    %97 = vector.load %arg11[%c1_76, %c0_77, %c0_78] : memref<2x4x4xf32, #tpu.memory_space<vmem>>, vector<1x4x4xf32>
    %98 = vector.shape_cast %97 : vector<1x4x4xf32> to vector<4x4xf32>
    %cst_79 = arith.constant dense<0.000000e+00> : vector<4x8xf32>
    %99 = tpu.matmul %98, %46, %cst_79 {dimension_numbers = #tpu.dot_dimension_numbers<[1], [0], [0], [1], [0, 0, 1, 1], [], []>} : vector<4x4xf32>, vector<4x8xf32>, vector<4x8xf32> -> vector<4x8xf32>
    %c1_80 = arith.constant 1 : index
    %c0_81 = arith.constant 0 : index
    %c0_82 = arith.constant 0 : index
    %100 = vector.load %arg12[%c1_80, %c0_81, %c0_82] : memref<2x4x4xf32, #tpu.memory_space<vmem>>, vector<1x4x4xf32>
    %101 = vector.shape_cast %100 : vector<1x4x4xf32> to vector<4x4xf32>
    %cst_83 = arith.constant dense<0.000000e+00> : vector<4x8xf32>
    %102 = tpu.matmul %101, %96, %cst_83 {dimension_numbers = #tpu.dot_dimension_numbers<[1], [0], [0], [1], [0, 0, 1, 1], [], []>} : vector<4x4xf32>, vector<4x8xf32>, vector<4x8xf32> -> vector<4x8xf32>
    %103 = arith.addf %99, %102 : vector<4x8xf32>
    %c1_84 = arith.constant 1 : index
    %c0_85 = arith.constant 0 : index
    %c0_86 = arith.constant 0 : index
    %104 = vector.load %arg13[%c1_84, %c0_85, %c0_86] : memref<2x4x4xf32, #tpu.memory_space<vmem>>, vector<1x4x4xf32>
    %105 = vector.shape_cast %104 : vector<1x4x4xf32> to vector<4x4xf32>
    %cst_87 = arith.constant dense<0.000000e+00> : vector<4x8xf32>
    %106 = tpu.matmul %105, %46, %cst_87 {dimension_numbers = #tpu.dot_dimension_numbers<[1], [0], [0], [1], [0, 0, 1, 1], [], []>} : vector<4x4xf32>, vector<4x8xf32>, vector<4x8xf32> -> vector<4x8xf32>
    %c1_88 = arith.constant 1 : index
    %c0_89 = arith.constant 0 : index
    %c0_90 = arith.constant 0 : index
    %107 = vector.load %arg14[%c1_88, %c0_89, %c0_90] : memref<2x4x4xf32, #tpu.memory_space<vmem>>, vector<1x4x4xf32>
    %108 = vector.shape_cast %107 : vector<1x4x4xf32> to vector<4x4xf32>
    %cst_91 = arith.constant dense<0.000000e+00> : vector<4x8xf32>
    %109 = tpu.matmul %108, %96, %cst_91 {dimension_numbers = #tpu.dot_dimension_numbers<[1], [0], [0], [1], [0, 0, 1, 1], [], []>} : vector<4x4xf32>, vector<4x8xf32>, vector<4x8xf32> -> vector<4x8xf32>
    %110 = arith.addf %106, %109 : vector<4x8xf32>
    %c1_92 = arith.constant 1 : index
    %c0_93 = arith.constant 0 : index
    %c0_94 = arith.constant 0 : index
    %111 = vector.load %arg15[%c1_92, %c0_93, %c0_94] : memref<2x8x8xf32, #tpu.memory_space<vmem>>, vector<1x4x8xf32>
    %112 = vector.shape_cast %111 : vector<1x4x8xf32> to vector<4x8xf32>
    %113 = vector.shape_cast %103 : vector<4x8xf32> to vector<1x4x8xf32>
    tpu.vector_store %arg15[%c1_92, %c0_93, %c0_94], %113 {strides = array<i32>} : memref<2x8x8xf32, #tpu.memory_space<vmem>>, vector<1x4x8xf32>,
    %c1_95 = arith.constant 1 : index
    %c4_96 = arith.constant 4 : index
    %c0_97 = arith.constant 0 : index
    %114 = vector.load %arg15[%c1_95, %c4_96, %c0_97] : memref<2x8x8xf32, #tpu.memory_space<vmem>>, vector<1x4x8xf32>
    %115 = vector.shape_cast %114 : vector<1x4x8xf32> to vector<4x8xf32>
    %116 = vector.shape_cast %110 : vector<4x8xf32> to vector<1x4x8xf32>
    tpu.vector_store %arg15[%c1_95, %c4_96, %c0_97], %116 {strides = array<i32>} : memref<2x8x8xf32, #tpu.memory_space<vmem>>, vector<1x4x8xf32>,
    %c2 = arith.constant 2 : index
    %c0_98 = arith.constant 0 : index
    %c0_99 = arith.constant 0 : index
    %117 = vector.load %arg4[%c2, %c0_98, %c0_99] : memref<3x64x4xf32, #tpu.memory_space<vmem>>, vector<1x64x4xf32>
    %118 = vector.shape_cast %117 : vector<1x64x4xf32> to vector<64x4xf32>
    %cst_100 = arith.constant dense<0.000000e+00> : vector<64x8xf32>
    %119 = tpu.matmul %118, %103, %cst_100 {dimension_numbers = #tpu.dot_dimension_numbers<[1], [0], [0], [1], [0, 0, 1, 1], [], []>} : vector<64x4xf32>, vector<4x8xf32>, vector<64x8xf32> -> vector<64x8xf32>
    %c2_101 = arith.constant 2 : index
    %c0_102 = arith.constant 0 : index
    %c0_103 = arith.constant 0 : index
    %120 = vector.load %arg5[%c2_101, %c0_102, %c0_103] : memref<3x64x1xf32, #tpu.memory_space<vmem>>, vector<1x64x1xf32>
    %121 = vector.shape_cast %120 : vector<1x64x1xf32> to vector<64x1xf32>
    %122 = vector.broadcast %121 : vector<64x1xf32> to vector<64x8xf32>
    %123 = vector.broadcast %2 : vector<1x8xf32> to vector<64x8xf32>
    %124 = arith.mulf %122, %123 : vector<64x8xf32>
    %125 = arith.addf %119, %124 : vector<64x8xf32>
    %c2_104 = arith.constant 2 : index
    %c0_105 = arith.constant 0 : index
    %c0_106 = arith.constant 0 : index
    %126 = vector.load %arg6[%c2_104, %c0_105, %c0_106] : memref<3x64x1xf32, #tpu.memory_space<vmem>>, vector<1x64x1xf32>
    %127 = vector.shape_cast %126 : vector<1x64x1xf32> to vector<64x1xf32>
    %128 = vector.broadcast %127 : vector<64x1xf32> to vector<64x8xf32>
    %129 = arith.addf %125, %128 : vector<64x8xf32>
    %cst_107 = arith.constant 0.000000e+00 : f32
    %130 = vector.broadcast %cst_107 : f32 to vector<64x8xf32>
    %131 = arith.maximumf %129, %130 : vector<64x8xf32>
    %c2_108 = arith.constant 2 : index
    %c0_109 = arith.constant 0 : index
    %c0_110 = arith.constant 0 : index
    %132 = vector.load %arg7[%c2_108, %c0_109, %c0_110] : memref<3x64x64xf32, #tpu.memory_space<vmem>>, vector<1x64x64xf32>
    %133 = vector.shape_cast %132 : vector<1x64x64xf32> to vector<64x64xf32>
    %cst_111 = arith.constant dense<0.000000e+00> : vector<64x8xf32>
    %134 = tpu.matmul %133, %131, %cst_111 {dimension_numbers = #tpu.dot_dimension_numbers<[1], [0], [0], [1], [0, 0, 1, 1], [], []>} : vector<64x64xf32>, vector<64x8xf32>, vector<64x8xf32> -> vector<64x8xf32>
    %c2_112 = arith.constant 2 : index
    %c0_113 = arith.constant 0 : index
    %c0_114 = arith.constant 0 : index
    %135 = vector.load %arg8[%c2_112, %c0_113, %c0_114] : memref<3x64x1xf32, #tpu.memory_space<vmem>>, vector<1x64x1xf32>
    %136 = vector.shape_cast %135 : vector<1x64x1xf32> to vector<64x1xf32>
    %137 = vector.broadcast %136 : vector<64x1xf32> to vector<64x8xf32>
    %138 = arith.addf %134, %137 : vector<64x8xf32>
    %cst_115 = arith.constant 0.000000e+00 : f32
    %139 = vector.broadcast %cst_115 : f32 to vector<64x8xf32>
    %140 = arith.maximumf %138, %139 : vector<64x8xf32>
    %c2_116 = arith.constant 2 : index
    %c0_117 = arith.constant 0 : index
    %c0_118 = arith.constant 0 : index
    %141 = vector.load %arg9[%c2_116, %c0_117, %c0_118] : memref<3x16x64xf32, #tpu.memory_space<vmem>>, vector<1x16x64xf32>
    %142 = vector.shape_cast %141 : vector<1x16x64xf32> to vector<16x64xf32>
    %cst_119 = arith.constant dense<0.000000e+00> : vector<16x8xf32>
    %143 = tpu.matmul %142, %140, %cst_119 {dimension_numbers = #tpu.dot_dimension_numbers<[1], [0], [0], [1], [0, 0, 1, 1], [], []>} : vector<16x64xf32>, vector<64x8xf32>, vector<16x8xf32> -> vector<16x8xf32>
    %c2_120 = arith.constant 2 : index
    %c0_121 = arith.constant 0 : index
    %c0_122 = arith.constant 0 : index
    %144 = vector.load %arg10[%c2_120, %c0_121, %c0_122] : memref<3x16x1xf32, #tpu.memory_space<vmem>>, vector<1x16x1xf32>
    %145 = vector.shape_cast %144 : vector<1x16x1xf32> to vector<16x1xf32>
    %146 = vector.broadcast %145 : vector<16x1xf32> to vector<16x8xf32>
    %147 = arith.addf %143, %146 : vector<16x8xf32>
    %148 = vector.extract_strided_slice %147 {offsets = [0, 0], sizes = [4, 8], strides = [1, 1]} : vector<16x8xf32> to vector<4x8xf32>
    %149 = vector.extract_strided_slice %147 {offsets = [8, 0], sizes = [4, 8], strides = [1, 1]} : vector<16x8xf32> to vector<4x8xf32>
    %150 = math.tanh %149 : vector<4x8xf32>
    %151 = math.exp %150 : vector<4x8xf32>
    %152 = arith.mulf %110, %151 : vector<4x8xf32>
    %153 = arith.addf %152, %148 : vector<4x8xf32>
    %c0_123 = arith.constant 0 : index
    %c0_124 = arith.constant 0 : index
    %154 = vector.load %arg16[%c0_123, %c0_124] : memref<8x8xf32, #tpu.memory_space<vmem>>, vector<4x8xf32>
    tpu.vector_store %arg16[%c0_123, %c0_124], %103 {strides = array<i32>} : memref<8x8xf32, #tpu.memory_space<vmem>>, vector<4x8xf32>,
    %c4_125 = arith.constant 4 : index
    %c0_126 = arith.constant 0 : index
    %155 = vector.load %arg16[%c4_125, %c0_126] : memref<8x8xf32, #tpu.memory_space<vmem>>, vector<4x8xf32>
    tpu.vector_store %arg16[%c4_125, %c0_126], %153 {strides = array<i32>} : memref<8x8xf32, #tpu.memory_space<vmem>>, vector<4x8xf32>,
    return
  }
  func.func @transform_0(%arg0: i32) -> (i32, i32) {
    %c0_i32 = arith.constant 0 : i32
    %c0_i32_0 = arith.constant 0 : i32
    return %c0_i32, %arg0 : i32, i32
  }
  func.func @transform_1(%arg0: i32) -> (i32, i32) {
    %c0_i32 = arith.constant 0 : i32
    %c0_i32_0 = arith.constant 0 : i32
    return %c0_i32, %arg0 : i32, i32
  }
  func.func @transform_2(%arg0: i32) -> (i32, i32) {
    %c0_i32 = arith.constant 0 : i32
    %c0_i32_0 = arith.constant 0 : i32
    return %c0_i32, %arg0 : i32, i32
  }
  func.func @transform_3(%arg0: i32) -> (i32, i32, i32) {
    %c0_i32 = arith.constant 0 : i32
    %c0_i32_0 = arith.constant 0 : i32
    %c0_i32_1 = arith.constant 0 : i32
    %c0_i32_2 = arith.constant 0 : i32
    return %c0_i32, %c0_i32_0, %c0_i32_1 : i32, i32, i32
  }
  func.func @transform_4(%arg0: i32) -> (i32, i32, i32) {
    %c0_i32 = arith.constant 0 : i32
    %c0_i32_0 = arith.constant 0 : i32
    %c0_i32_1 = arith.constant 0 : i32
    %c0_i32_2 = arith.constant 0 : i32
    return %c0_i32, %c0_i32_0, %c0_i32_1 : i32, i32, i32
  }
  func.func @transform_5(%arg0: i32) -> (i32, i32, i32) {
    %c0_i32 = arith.constant 0 : i32
    %c0_i32_0 = arith.constant 0 : i32
    %c0_i32_1 = arith.constant 0 : i32
    %c0_i32_2 = arith.constant 0 : i32
    return %c0_i32, %c0_i32_0, %c0_i32_1 : i32, i32, i32
  }
  func.func @transform_6(%arg0: i32) -> (i32, i32, i32) {
    %c0_i32 = arith.constant 0 : i32
    %c0_i32_0 = arith.constant 0 : i32
    %c0_i32_1 = arith.constant 0 : i32
    %c0_i32_2 = arith.constant 0 : i32
    return %c0_i32, %c0_i32_0, %c0_i32_1 : i32, i32, i32
  }
  func.func @transform_7(%arg0: i32) -> (i32, i32, i32) {
    %c0_i32 = arith.constant 0 : i32
    %c0_i32_0 = arith.constant 0 : i32
    %c0_i32_1 = arith.constant 0 : i32
    %c0_i32_2 = arith.constant 0 : i32
    return %c0_i32, %c0_i32_0, %c0_i32_1 : i32, i32, i32
  }
  func.func @transform_8(%arg0: i32) -> (i32, i32, i32) {
    %c0_i32 = arith.constant 0 : i32
    %c0_i32_0 = arith.constant 0 : i32
    %c0_i32_1 = arith.constant 0 : i32
    %c0_i32_2 = arith.constant 0 : i32
    return %c0_i32, %c0_i32_0, %c0_i32_1 : i32, i32, i32
  }
  func.func @transform_9(%arg0: i32) -> (i32, i32, i32) {
    %c0_i32 = arith.constant 0 : i32
    %c0_i32_0 = arith.constant 0 : i32
    %c0_i32_1 = arith.constant 0 : i32
    %c0_i32_2 = arith.constant 0 : i32
    return %c0_i32, %c0_i32_0, %c0_i32_1 : i32, i32, i32
  }
  func.func @transform_10(%arg0: i32) -> (i32, i32, i32) {
    %c0_i32 = arith.constant 0 : i32
    %c0_i32_0 = arith.constant 0 : i32
    %c0_i32_1 = arith.constant 0 : i32
    %c0_i32_2 = arith.constant 0 : i32
    return %c0_i32, %c0_i32_0, %c0_i32_1 : i32, i32, i32
  }
  func.func @transform_11(%arg0: i32) -> (i32, i32, i32) {
    %c0_i32 = arith.constant 0 : i32
    %c0_i32_0 = arith.constant 0 : i32
    %c0_i32_1 = arith.constant 0 : i32
    %c0_i32_2 = arith.constant 0 : i32
    return %c0_i32, %c0_i32_0, %c0_i32_1 : i32, i32, i32
  }
  func.func @transform_12(%arg0: i32) -> (i32, i32, i32) {
    %c0_i32 = arith.constant 0 : i32
    %c0_i32_0 = arith.constant 0 : i32
    %c0_i32_1 = arith.constant 0 : i32
    %c0_i32_2 = arith.constant 0 : i32
    return %c0_i32, %c0_i32_0, %c0_i32_1 : i32, i32, i32
  }
  func.func @transform_13(%arg0: i32) -> (i32, i32, i32) {
    %c0_i32 = arith.constant 0 : i32
    %c0_i32_0 = arith.constant 0 : i32
    %c0_i32_1 = arith.constant 0 : i32
    %c0_i32_2 = arith.constant 0 : i32
    return %c0_i32, %c0_i32_0, %c0_i32_1 : i32, i32, i32
  }
  func.func @transform_14(%arg0: i32) -> (i32, i32, i32) {
    %c0_i32 = arith.constant 0 : i32
    %c0_i32_0 = arith.constant 0 : i32
    %c0_i32_1 = arith.constant 0 : i32
    return %c0_i32, %c0_i32_0, %arg0 : i32, i32, i32
  }
  func.func @transform_15(%arg0: i32) -> (i32, i32) {
    %c0_i32 = arith.constant 0 : i32
    %c0_i32_0 = arith.constant 0 : i32
    return %c0_i32, %arg0 : i32, i32
  }
}

</mosaic_0001>

<bundles_post_ra>
// kernel: tpu_custom_call.1
= control target key start
LH: loop header
LB: loop body
LE: loop exit
PB: predicated region body
PF: predicated region fallthrough
CT: control target
= control target key end

     0   :  { %21 = vsyncpa [#allocation3], 0  ;;  %vm149_vm0 = vcmask 1043456   ;;  %v3059_v3 = vmov 0   ;;  %vm124_vm1 = vcmask 31744   ;;  %s3748_s0 = inlined_call_operand.vmem [shape: f32[4,8], index: 0, kind: input, shape index: {}]   ;;  %s3749_s1 = inlined_call_operand.vmem [shape: f32[4,8], index: 1, kind: input, shape index: {}]   ;;  %s3750_s2 = inlined_call_operand.vmem [shape: f32[1,8], index: 2, kind: input, shape index: {}]   ;;  %s3751_s3 = inlined_call_operand.vmem [shape: f32[3,64,4], index: 3, kind: input, shape index: {}]   ;;  %s3752_s4 = inlined_call_operand.vmem [shape: f32[3,64,1], index: 4, kind: input, shape index: {}]   ;;  %s3753_s5 = inlined_call_operand.vmem [shape: f32[3,64,1], index: 5, kind: input, shape index: {}]   ;;  %s3754_s6 = inlined_call_operand.vmem [shape: f32[3,64,64], index: 6, kind: input, shape index: {}]   ;;  %s3755_s7 = inlined_call_operand.vmem [shape: f32[3,64,1], index: 7, kind: input, shape index: {}]   ;;  %s3756_s8 = inlined_call_operand.vmem [shape: f32[3,16,64], index: 8, kind: input, shape index: {}]   ;;  %s3757_s9 = inlined_call_operand.vmem [shape: f32[3,16,1], index: 9, kind: input, shape index: {}]   ;;  %s3758_s10 = inlined_call_operand.vmem [shape: f32[2,4,4], index: 10, kind: input, shape index: {}]   ;;  %s3759_s11 = inlined_call_operand.vmem [shape: f32[2,4,4], index: 11, kind: input, shape index: {}]   ;;  %s3760_s12 = inlined_call_operand.vmem [shape: f32[2,4,4], index: 12, kind: input, shape index: {}]   ;;  %s3761_s13 = inlined_call_operand.vmem [shape: f32[2,4,4], index: 13, kind: input, shape index: {}]   ;;  %s3762_s14 = inlined_call_operand.hbm [shape: f32[2,8,8], index: 14, kind: output, shape index: {0}]   ;;  %s3763_s15 = inlined_call_operand.hbm [shape: f32[8,8], index: 15, kind: output, shape index: {1}]  }
   0x1   :  { %v3149_v0 = vld [vmem:[%s3748_s0] sm:$0xf]  ;;  %v64_v1 = vld [vmem:[%s3752_s4 + $0x10] sm:$0xff]  ;;  %2998 = vset.pattern.permute.xlu1 %v3059_v3  ;;  %2997 = vset.pattern.permute.xlu0 %v3059_v3  ;;  %v55_v5 = vld [vmem:[%s3751_s3 + $0x8] sm:$0xff] }
   0x2   :  { %v62_v2 = vld [vmem:[%s3752_s4] sm:$0xff]  ;;  %2663 = vmatprep.subr.msk.mxu0 %vm149_vm0, %v3149_v0  ;;  %82 = vperm.xlu1 %2998, %v64_v1   ;;  %v65_v6 = vld [vmem:[%s3752_s4 + $0x18] sm:$0xff]  ;;  %v56_v7 = vld [vmem:[%s3751_s3 + $0x10] sm:$0xff] }
   0x3   :  { %v54_v4 = vld [vmem:[%s3751_s3] sm:$0xff]  ;;  %72 = vperm.xlu0 %2997, %v62_v2   ;;  %2664 = vmatpush3.msk.msra.mxu0 %vm149_vm0, %v3149_v0  ;;  %v63_v8 = vld [vmem:[%s3752_s4 + $0x8] sm:$0xff]  ;;  %v57_v9 = vld [vmem:[%s3751_s3 + $0x18] sm:$0xff] }
   0x4   :  { %2665 = vmatprep.mubr.msk.f32.mxu0 %vm124_vm1, %v54_v4  ;;  %v259_v10 = vld [vmem:[%s3753_s5 + $0x8] sm:$0xff]  ;;  %v58_v11 = vld [vmem:[%s3751_s3 + $0x20] sm:$0xff]  ;;  %v60_v15 = vld [vmem:[%s3751_s3 + $0x30] sm:$0xff] }
   0x5   :  { %2666 = vmatmul.mubr.msk.f32.vlgmr.msra.gmra.mrb[0].mxu0 %vm124_vm1, %v55_v5  ;;  %v258_v12 = vld [vmem:[%s3753_s5] sm:$0xff]  ;;  %v59_v13 = vld [vmem:[%s3751_s3 + $0x28] sm:$0xff]  ;;  %v61_v17 = vld [vmem:[%s3751_s3 + $0x38] sm:$0xff] }
   0x6   :  { %87 = vperm.xlu1 %2998, %v65_v6   ;;  %2668 = vmatprep.mubr.msk.f32.mxu0 %vm124_vm1, %v56_v7  ;;  %v67_v14 = vld [vmem:[%s3752_s4 + $0x28] sm:$0xff]  ;;  %v66_v16 = vld [vmem:[%s3752_s4 + $0x20] sm:$0xff]  ;;  %v261_v18 = vld [vmem:[%s3753_s5 + $0x18] sm:$0xff] }
   0x7   :  { %77 = vperm.xlu0 %2997, %v63_v8   ;;  %v260_v19 = vld [vmem:[%s3753_s5 + $0x10] sm:$0xff]  ;;  %v69_v20 = vld [vmem:[%s3752_s4 + $0x38] sm:$0xff]  ;;  %v263_v22 = vld [vmem:[%s3753_s5 + $0x28] sm:$0xff] }
   0x8   :  { %v68_v21 = vld [vmem:[%s3752_s4 + $0x30] sm:$0xff]  ;;  %v262_v23 = vld [vmem:[%s3753_s5 + $0x20] sm:$0xff]  ;;  %v265_v24 = vld [vmem:[%s3753_s5 + $0x38] sm:$0xff] }
   0x9   :  { %2669 = vmatmul.mubr.msk.f32.gmra.mrb[2].mxu0 %vm124_vm1, %v57_v9  ;;  %v264_v25 = vld [vmem:[%s3753_s5 + $0x30] sm:$0xff] }
   0xa   :  { %273 = vperm.xlu1 %2998, %v259_v10   ;;  %2671 = vmatprep.mubr.msk.f32.mxu0 %vm124_vm1, %v58_v11 }
   0xb   :  { %268 = vperm.xlu0 %2997, %v258_v12  }
   0xd   :  { %2672 = vmatmul.mubr.msk.f32.gmra.mrb[4].mxu0 %vm124_vm1, %v59_v13 }
   0xe   :  { %97 = vperm.xlu1 %2998, %v67_v14   ;;  %2674 = vmatprep.mubr.msk.f32.mxu0 %vm124_vm1, %v60_v15 }
   0xf   :  { %92 = vperm.xlu0 %2997, %v66_v16  }
  0x11   :  { %2675 = vmatmul.mubr.msk.f32.gmra.mrb[6].mxu0 %vm124_vm1, %v61_v17 }
  0x12   :  { %283 = vperm.xlu1 %2998, %v261_v18  }
  0x13   :  { %278 = vperm.xlu0 %2997, %v260_v19  }
  0x16   :  { %107 = vperm.xlu1 %2998, %v69_v20  }
  0x17   :  { %102 = vperm.xlu0 %2997, %v68_v21  }
  0x1a   :  { %293 = vperm.xlu1 %2998, %v263_v22  }
  0x1b   :  { %288 = vperm.xlu0 %2997, %v262_v23  }
  0x1c   :  { %22 = vsyncpa [#allocation5], 0  ;;  %v331_v26 = vld [vmem:[%s3755_s7 + $0x8] sm:$0xff]  ;;  %v330_v27 = vld [vmem:[%s3755_s7] sm:$0xff]  ;;  %vm378_vm2 = vcmask 523264   ;;  %vm3061_vm3 = vmmov 0  }
  0x1d   :  { %v333_v28 = vld [vmem:[%s3755_s7 + $0x18] sm:$0xff]  ;;  %v332_v29 = vld [vmem:[%s3755_s7 + $0x10] sm:$0xff]  ;;  %v335_v30 = vld [vmem:[%s3755_s7 + $0x28] sm:$0xff]  ;;  %vm915_vm4 = vcmask 60416   ;;  %s3062_s24 = smov [#allocation2]  }
  0x1e   :  { %303 = vperm.xlu1 %2998, %v265_v24   ;;  %v334_v31 = vld [vmem:[%s3755_s7 + $0x20] sm:$0xff]  ;;  %v337_v32 = vld [vmem:[%s3755_s7 + $0x38] sm:$0xff]  ;;  %v336_v33 = vld [vmem:[%s3755_s7 + $0x30] sm:$0xff]  ;;  %s2351_s25 = sshll.u32 %s3062_s24, 4  ;;  %s2352_s25 = int_to_ptr.vmem [resolvable:$true] %s2351_s25 }
  0x1f   :  { %298 = vperm.xlu0 %2997, %v264_v25   ;;  %v518_v34 = vld [vmem:[%s3757_s9] sm:$0xff]  ;;  %v519_v35 = vld [vmem:[%s3757_s9 + $0x8] sm:$0xff]  ;;  %v2415_v38 = vld [vmem:[%s3752_s4 + $0x58] sm:$0xff]  ;;  %s3011_s0 = scalar_lea.vmem %s2352_s25, 256  ;;  %p3016_p1 = scmp.lt.s32.totalorder %s2352_s25, %s2352_s25 }
  0x20   :  { %v2413_v36 = vld [vmem:[%s3752_s4 + $0x48] sm:$0xff]  ;;  %v2412_v37 = vld [vmem:[%s3752_s4 + $0x40] sm:$0xff]  ;;  %v2414_v39 = vld [vmem:[%s3752_s4 + $0x50] sm:$0xff]  ;;  %p3012_p0 = scmp.ne.s32.totalorder %s2352_s25, %s3011_s0  ;;  %p3017_p2 = scmp.lt.s32.totalorder %s3011_s0, %s3011_s0 }
  0x21   :  { %v2430_v40 = vld [vmem:[%s3753_s5 + $0x48] sm:$0xff]  ;;  %v2429_v41 = vld [vmem:[%s3753_s5 + $0x40] sm:$0xff]  ;;  %v2432_v44 = vld [vmem:[%s3753_s5 + $0x58] sm:$0xff] }
  0x22   :  { %345 = vperm.xlu1 %2998, %v331_v26   ;;  %v2417_v42 = vld [vmem:[%s3752_s4 + $0x68] sm:$0xff]  ;;  %v2416_v43 = vld [vmem:[%s3752_s4 + $0x60] sm:$0xff]  ;;  %v2431_v45 = vld [vmem:[%s3753_s5 + $0x50] sm:$0xff]  ;;  %p3018_p3 = por %p3017_p2, %p3016_p1 }
  0x23   :  { %340 = vperm.xlu0 %2997, %v330_v27   ;;  %v2419_v46 = vld [vmem:[%s3752_s4 + $0x78] sm:$0xff]  ;;  %v2418_v47 = vld [vmem:[%s3752_s4 + $0x70] sm:$0xff]  ;;  %v2434_v48 = vld [vmem:[%s3753_s5 + $0x68] sm:$0xff] }
  0x24   :  { %v2433_v49 = vld [vmem:[%s3753_s5 + $0x60] sm:$0xff]  ;;  %v2436_v50 = vld [vmem:[%s3753_s5 + $0x78] sm:$0xff]  ;;  %v2435_v51 = vld [vmem:[%s3753_s5 + $0x70] sm:$0xff]  ;;  %p3019_p4 = pnand %p3018_p3, %p3012_p0 }
  0x25   :  { %v2446_v52 = vld [vmem:[%s3755_s7 + $0x48] sm:$0xff]  ;;  %v2445_v53 = vld [vmem:[%s3755_s7 + $0x40] sm:$0xff]  ;;  %v2448_v54 = vld [vmem:[%s3755_s7 + $0x58] sm:$0xff] }
  0x26   :  { %355 = vperm.xlu1 %2998, %v333_v28   ;;  %v2447_v55 = vld [vmem:[%s3755_s7 + $0x50] sm:$0xff]  ;;  %v2450_v56 = vld [vmem:[%s3755_s7 + $0x68] sm:$0xff]  ;;  %v2449_v57 = vld [vmem:[%s3755_s7 + $0x60] sm:$0xff] }
  0x27   :  { %350 = vperm.xlu0 %2997, %v332_v29   ;;  %v2452_v58 = vld [vmem:[%s3755_s7 + $0x78] sm:$0xff]  ;;  %v2451_v59 = vld [vmem:[%s3755_s7 + $0x70] sm:$0xff]  ;;  %v2488_v62 = vld [vmem:[%s3752_s4 + $0x88] sm:$0xff] }
  0x28   :  { %v2463_v60 = vld [vmem:[%s3757_s9 + $0x10] sm:$0xff]  ;;  %v2464_v61 = vld [vmem:[%s3757_s9 + $0x18] sm:$0xff]  ;;  %v2487_v63 = vld [vmem:[%s3752_s4 + $0x80] sm:$0xff] }
  0x29   :  { %v2490_v1 = vld [vmem:[%s3752_s4 + $0x98] sm:$0xff]  ;;  %v2489_v2 = vld [vmem:[%s3752_s4 + $0x90] sm:$0xff]  ;;  %v2505_v3 = vld [vmem:[%s3753_s5 + $0x88] sm:$0xff] }
  0x2a   :  { %365 = vperm.xlu1 %2998, %v335_v30   ;;  %v322_v4 = vld [vmem:[%s3754_s6] sm:$0xff]  ;;  %v2492_v6 = vld [vmem:[%s3752_s4 + $0xa8] sm:$0xff]  ;;  %v2507_v8 = vld [vmem:[%s3753_s5 + $0x98] sm:$0xff] }
  0x2b   :  { %360 = vperm.xlu0 %2997, %v334_v31   ;;  %v2504_v5 = vld [vmem:[%s3753_s5 + $0x80] sm:$0xff]  ;;  %2693 = vmatprep.mubr.msk.f32.mxu1 %vm378_vm2, %v322_v4  ;;  %v2506_v9 = vld [vmem:[%s3753_s5 + $0x90] sm:$0xff]  ;;  %v2494_v10 = vld [vmem:[%s3752_s4 + $0xb8] sm:$0xff] }
  0x2c   :  { %v2491_v7 = vld [vmem:[%s3752_s4 + $0xa0] sm:$0xff]  ;;  %v2493_v11 = vld [vmem:[%s3752_s4 + $0xb0] sm:$0xff]  ;;  %v2509_v12 = vld [vmem:[%s3753_s5 + $0xa8] sm:$0xff] }
  0x2d   :  { %v2508_v13 = vld [vmem:[%s3753_s5 + $0xa0] sm:$0xff]  ;;  %v2511_v14 = vld [vmem:[%s3753_s5 + $0xb8] sm:$0xff]  ;;  %v2510_v15 = vld [vmem:[%s3753_s5 + $0xb0] sm:$0xff] }
  0x2e   :  { %375 = vperm.xlu1 %2998, %v337_v32   ;;  %v2521_v16 = vld [vmem:[%s3755_s7 + $0x88] sm:$0xff]  ;;  %v2520_v17 = vld [vmem:[%s3755_s7 + $0x80] sm:$0xff]  ;;  %v2523_v18 = vld [vmem:[%s3755_s7 + $0x98] sm:$0xff] }
  0x2f   :  { %370 = vperm.xlu0 %2997, %v336_v33   ;;  %v2522_v19 = vld [vmem:[%s3755_s7 + $0x90] sm:$0xff]  ;;  %v2525_v20 = vld [vmem:[%s3755_s7 + $0xa8] sm:$0xff]  ;;  %v2524_v21 = vld [vmem:[%s3755_s7 + $0xa0] sm:$0xff] }
  0x30   :  { %v2527_v22 = vld [vmem:[%s3755_s7 + $0xb8] sm:$0xff]  ;;  %v2526_v23 = vld [vmem:[%s3755_s7 + $0xb0] sm:$0xff]  ;;  %v2538_v24 = vld [vmem:[%s3757_s9 + $0x20] sm:$0xff] }
  0x31   :  { %v2539_v25 = vld [vmem:[%s3757_s9 + $0x28] sm:$0xff] }
  0x32   :  { %522 = vperm.xlu1 %2998, %v518_v34   ;;  %v3428_v34 = vld [vmem:[%s3750_s2] ss:$0 sm:$0xff] }
  0x33   :  { %527 = vperm.xlu0 %2997, %v519_v35  }
  0x36   :  { %943 = vperm.xlu1 %2998, %v2413_v36  }
  0x37   :  { %938 = vperm.xlu0 %2997, %v2412_v37  }
  0x3a   :  { %953 = vperm.xlu1 %2998, %v2415_v38  }
  0x3b   :  { %948 = vperm.xlu0 %2997, %v2414_v39  }
  0x3e   :  { %1132 = vperm.xlu1 %2998, %v2430_v40  }
  0x3f   :  { %1127 = vperm.xlu0 %2997, %v2429_v41  }
  0x42   :  { %963 = vperm.xlu1 %2998, %v2417_v42  }
  0x43   :  { %958 = vperm.xlu0 %2997, %v2416_v43  }
  0x46   :  { %1142 = vperm.xlu1 %2998, %v2432_v44  }
  0x47   :  { %1137 = vperm.xlu0 %2997, %v2431_v45  }
  0x4a   :  { %973 = vperm.xlu1 %2998, %v2419_v46  }
  0x4b   :  { %968 = vperm.xlu0 %2997, %v2418_v47  }
  0x4e   :  { %1152 = vperm.xlu1 %2998, %v2434_v48  }
  0x4f   :  { %1147 = vperm.xlu0 %2997, %v2433_v49  }
  0x52   :  { %1162 = vperm.xlu1 %2998, %v2436_v50  }
  0x53   :  { %1157 = vperm.xlu0 %2997, %v2435_v51  }
  0x56   :  { %1206 = vperm.xlu1 %2998, %v2446_v52  }
  0x57   :  { %1201 = vperm.xlu0 %2997, %v2445_v53  }
  0x5a   :  { %1216 = vperm.xlu1 %2998, %v2448_v54  }
  0x5b   :  { %1211 = vperm.xlu0 %2997, %v2447_v55  }
  0x5e   :  { %1226 = vperm.xlu1 %2998, %v2450_v56  }
  0x5f   :  { %1221 = vperm.xlu0 %2997, %v2449_v57  }
  0x62   :  { %1236 = vperm.xlu1 %2998, %v2452_v58  }
  0x63   :  { %1231 = vperm.xlu0 %2997, %v2451_v59  }
  0x66   :  { %1384 = vperm.xlu1 %2998, %v2463_v60  }
  0x67   :  { %1389 = vperm.xlu0 %2997, %v2464_v61  }
  0x6a   :  { %1809 = vperm.xlu1 %2998, %v2488_v62  }
  0x6b   :  { %1804 = vperm.xlu0 %2997, %v2487_v63  }
  0x6e   :  { %1819 = vperm.xlu1 %2998, %v2490_v1  }
  0x6f   :  { %1814 = vperm.xlu0 %2997, %v2489_v2  }
  0x72   :  { %1998 = vperm.xlu1 %2998, %v2505_v3  }
  0x73   :  { %1993 = vperm.xlu0 %2997, %v2504_v5  }
  0x76   :  { %1829 = vperm.xlu1 %2998, %v2492_v6  }
  0x77   :  { %1824 = vperm.xlu0 %2997, %v2491_v7  }
  0x7a   :  { %2008 = vperm.xlu1 %2998, %v2507_v8  }
  0x7b   :  { %2003 = vperm.xlu0 %2997, %v2506_v9  }
  0x7e   :  { %1839 = vperm.xlu1 %2998, %v2494_v10  }
  0x7f   :  { %1834 = vperm.xlu0 %2997, %v2493_v11  }
  0x81   :  { %v83_v26 = vpop.permute.xlu1 %82 }
  0x82   :  { %2018 = vperm.xlu1 %2998, %v2509_v12   ;;  %v73_v27 = vpop.permute.xlu0 %72  ;;  %v118_v47 = vmul.f32 %v3428_v34, %v83_v26  ;;  %v325_v26 = vld [vmem:[%s3754_s6 + $0x18] sm:$0xff] }
  0x83   :  { %2013 = vperm.xlu0 %2997, %v2508_v13   ;;  %v116_v38 = vmul.f32 %v3428_v34, %v73_v27  ;;  %v326_v27 = vld [vmem:[%s3754_s6 + $0x20] sm:$0xff] }
  0x85   :  { %v88_v28 = vpop.permute.xlu1 %87 }
  0x86   :  { %2028 = vperm.xlu1 %2998, %v2511_v14   ;;  %v78_v29 = vpop.permute.xlu0 %77  ;;  %v119_v44 = vmul.f32 %v3428_v34, %v88_v28  ;;  %v327_v28 = vld [vmem:[%s3754_s6 + $0x28] sm:$0xff] }
  0x87   :  { %2023 = vperm.xlu0 %2997, %v2510_v15   ;;  %v117_v37 = vmul.f32 %v3428_v34, %v78_v29  ;;  %v328_v29 = vld [vmem:[%s3754_s6 + $0x30] sm:$0xff] }
  0x89   :  { %v274_v30 = vpop.permute.xlu1 %273 }
  0x8a   :  { %2072 = vperm.xlu1 %2998, %v2521_v16   ;;  %v269_v31 = vpop.permute.xlu0 %268 }
  0x8b   :  { %2067 = vperm.xlu0 %2997, %v2520_v17  }
  0x8d   :  { %v98_v32 = vpop.permute.xlu1 %97 }
  0x8e   :  { %2082 = vperm.xlu1 %2998, %v2523_v18   ;;  %v93_v33 = vpop.permute.xlu0 %92  ;;  %v121_v55 = vmul.f32 %v3428_v34, %v98_v32 }
  0x8f   :  { %2077 = vperm.xlu0 %2997, %v2522_v19   ;;  %v120_v57 = vmul.f32 %v3428_v34, %v93_v33 }
  0x91   :  { %v284_v35 = vpop.permute.xlu1 %283 }
  0x92   :  { %2092 = vperm.xlu1 %2998, %v2525_v20   ;;  %v279_v36 = vpop.permute.xlu0 %278 }
  0x93   :  { %2087 = vperm.xlu0 %2997, %v2524_v21  }
  0x95   :  { %v108_v42 = vpop.permute.xlu1 %107 }
  0x96   :  { %2102 = vperm.xlu1 %2998, %v2527_v22   ;;  %v103_v45 = vpop.permute.xlu0 %102  ;;  %v123_v5 = vmul.f32 %v3428_v34, %v108_v42 }
  0x97   :  { %2097 = vperm.xlu0 %2997, %v2526_v23   ;;  %v122_v7 = vmul.f32 %v3428_v34, %v103_v45 }
  0x99   :  { %v294_v58 = vpop.permute.xlu1 %293 }
  0x9a   :  { %2250 = vperm.xlu1 %2998, %v2538_v24   ;;  %v289_v62 = vpop.permute.xlu0 %288  ;;  %v323_v24 = vld [vmem:[%s3754_s6 + $0x8] sm:$0xff] }
  0x9b   :  { %2255 = vperm.xlu0 %2997, %v2539_v25   ;;  %v324_v25 = vld [vmem:[%s3754_s6 + $0x10] sm:$0xff] }
  0x9d   :  { %v304_v14 = vpop.permute.xlu1 %303 }
  0x9e   :  { %v299_v17 = vpop.permute.xlu0 %298 }
  0xa1   :  { %v346_v32 = vpop.permute.xlu1 %345 }
  0xa2   :  { %v341_v33 = vpop.permute.xlu0 %340 }
  0xd8   :  { %v2667_v39 = vpop.f32.mrb[0].mxu0 }
  0xd9   :  { %v225_v40 = vadd.f32 %v2667_v39, %v117_v37  ;;  %v219_v41 = vpop.f32.mrb[1].mxu0  ;;  %v351_v37 = vpop.permute.xlu0 %350 }
  0xda   :  { %v220_v43 = vadd.f32 %v219_v41, %v116_v38 }
  0xdb   :  { %v307_v46 = vadd.f32 %v274_v30, %v225_v40  ;;  %v329_v30 = vld [vmem:[%s3754_s6 + $0x38] sm:$0xff] }
  0xdc   :  { %v306_v48 = vadd.f32 %v269_v31, %v220_v43  ;;  %v2670_v49 = vpop.f32.mrb[2].mxu0  ;;  %v516_v31 = vld [vmem:[%s3756_s8] sm:$0xff] }
  0xdd   :  { %v315_v50 = vmax.f32 %v307_v46, 0.0  ;;  %v235_v51 = vadd.f32 %v2670_v49, %v119_v44  ;;  %v229_v52 = vpop.f32.mrb[3].mxu0  ;;  %2721 = vmatprep.mubr.msk.f32.mxu0 %vm378_vm2, %v516_v31  ;;  %v361_v49 = vpop.permute.xlu0 %360  ;;  %v2410_v31 = vld [vmem:[%s3751_s3 + $0x70] sm:$0xff] }
  0xde   :  { %v314_v53 = vmax.f32 %v306_v48, 0.0  ;;  %v230_v54 = vadd.f32 %v229_v52, %v118_v47 }
  0xdf   :  { %v309_v56 = vadd.f32 %v284_v35, %v235_v51  ;;  %v356_v35 = vpop.permute.xlu1 %355 }
  0xe0   :  { %v308_v59 = vadd.f32 %v279_v36, %v230_v54  ;;  %v2673_v60 = vpop.f32.mrb[4].mxu0  ;;  %v2886_v61 = vpack.c.bf16 %v315_v50, %v314_v53 }
  0xe1   :  { %v317_v63 = vmax.f32 %v309_v56, 0.0  ;;  %v245_v1 = vadd.f32 %v2673_v60, %v121_v55  ;;  %v239_v2 = vpop.f32.mrb[5].mxu0 }
  0xe2   :  { %v316_v3 = vmax.f32 %v308_v59, 0.0  ;;  %v240_v4 = vadd.f32 %v239_v2, %v120_v57  ;;  %2887 = vmatprep.subr.bf16.mxu1 %v2886_v61 }
  0xe3   :  { %v311_v6 = vadd.f32 %v294_v58, %v245_v1  ;;  %2889 = vmatpush3.bf16.msra.mxu1 %v2886_v61  ;;  %v366_v46 = vpop.permute.xlu1 %365  ;;  %v371_v61 = vpop.permute.xlu0 %370 }
  0xe4   :  { %v310_v8 = vadd.f32 %v289_v62, %v240_v4  ;;  %v2676_v9 = vpop.f32.mrb[6].mxu0  ;;  %v2890_v10 = vpack.c.bf16 %v317_v63, %v316_v3 }
  0xe5   :  { %v319_v11 = vmax.f32 %v311_v6, 0.0  ;;  %v255_v12 = vadd.f32 %v2676_v9, %v123_v5  ;;  %v249_v13 = vpop.f32.mrb[7].mxu0  ;;  %v517_v6 = vld [vmem:[%s3756_s8 + $0x8] sm:$0xff] }
  0xe6   :  { %v318_v15 = vmax.f32 %v310_v8, 0.0  ;;  %v250_v16 = vadd.f32 %v249_v13, %v122_v7  ;;  %2891 = vmatprep.subr.bf16.mxu1 %v2890_v10  ;;  %v3060_v7 = vmov 0.0  }
  0xe7   :  { %v313_v18 = vadd.f32 %v304_v14, %v255_v12  ;;  %2893 = vmatpush3.bf16.msra.mxu1 %v2890_v10  ;;  %v376_v58 = vpop.permute.xlu1 %375  ;;  %v528_v8 = vpop.permute.xlu0 %527  ;;  %v52_v14 = vld [vmem:[%s3749_s1] sm:$0xf] }
  0xe8   :  { %v312_v19 = vadd.f32 %v299_v17, %v250_v16  ;;  %v2894_v20 = vpack.c.bf16 %v319_v11, %v318_v15 }
  0xe9   :  { %v321_v21 = vmax.f32 %v313_v18, 0.0 }
  0xea   :  { %v320_v22 = vmax.f32 %v312_v19, 0.0  ;;  %2895 = vmatprep.subr.bf16.mxu1 %v2894_v20 }
  0xeb   :  { %2897 = vmatpush3.bf16.msra.mxu1 %v2894_v20  ;;  %v523_v16 = vpop.permute.xlu1 %522  ;;  %v617_v20 = vld [vmem:[%s3759_s11] sm:$0xf] }
  0xec   :  { %v2898_v23 = vpack.c.bf16 %v321_v21, %v320_v22  ;;  %v616_v21 = vld [vmem:[%s3758_s10] sm:$0xf] }
  0xed   :  { %v768_v22 = vld [vmem:[%s3761_s13] sm:$0xf] }
  0xee   :  { %2899 = vmatprep.subr.bf16.mxu1 %v2898_v23 }
  0xef   :  { %2901 = vmatpush3.bf16.msra.mxu1 %v2898_v23  ;;  %v767_v23 = vld [vmem:[%s3760_s12] sm:$0xf] }
  0xf2   :  { %2694 = vmatmul.mubr.msk.f32.vlgmr.msra.gmra.mrb[0].mxu1 %vm378_vm2, %v323_v24  ;;  %v2404_v24 = vld [vmem:[%s3751_s3 + $0x40] sm:$0xff] }
  0xf3   :  { %2696 = vmatprep.mubr.msk.f32.mxu1 %vm378_vm2, %v324_v25 }
  0xf6   :  { %2697 = vmatmul.mubr.msk.f32.gmra.mrb[2].mxu1 %vm378_vm2, %v325_v26 }
  0xf7   :  { %2699 = vmatprep.mubr.msk.f32.mxu1 %vm378_vm2, %v326_v27  ;;  %v2406_v27 = vld [vmem:[%s3751_s3 + $0x50] sm:$0xff] }
  0xfa   :  { %2700 = vmatmul.mubr.msk.f32.gmra.mrb[4].mxu1 %vm378_vm2, %v327_v28  ;;  %v2407_v28 = vld [vmem:[%s3751_s3 + $0x58] sm:$0xff] }
  0xfb   :  { %2702 = vmatprep.mubr.msk.f32.mxu1 %vm378_vm2, %v328_v29  ;;  %v2408_v29 = vld [vmem:[%s3751_s3 + $0x60] sm:$0xff] }
  0xfe   :  { %2703 = vmatmul.mubr.msk.f32.gmra.mrb[6].mxu1 %vm378_vm2, %v329_v30  ;;  %v2409_v30 = vld [vmem:[%s3751_s3 + $0x68] sm:$0xff] }
 0x1c5   :  { %v2695_v36 = vpop.f32.mrb[0].mxu1 }
 0x1c6   :  { %v475_v38 = vadd.f32 %v2695_v36, %v346_v32  ;;  %v469_v39 = vpop.f32.mrb[1].mxu1  ;;  %v2411_v32 = vld [vmem:[%s3751_s3 + $0x78] sm:$0xff]  ;;  %v2437_v36 = vld [vmem:[%s3754_s6 + $0x40] sm:$0xff] }
 0x1c7   :  { %v470_v40 = vadd.f32 %v469_v39, %v341_v33  ;;  %2774 = vmatprep.mubr.msk.f32.mxu1 %vm378_vm2, %v2437_v36 }
 0x1c8   :  { %v509_v41 = vmax.f32 %v475_v38, 0.0  ;;  %v939_v38 = vpop.permute.xlu0 %938 }
 0x1c9   :  { %v508_v42 = vmax.f32 %v470_v40, 0.0  ;;  %v2698_v43 = vpop.f32.mrb[2].mxu1 }
 0x1ca   :  { %v485_v44 = vadd.f32 %v2698_v43, %v356_v35  ;;  %v479_v45 = vpop.f32.mrb[3].mxu1 }
 0x1cb   :  { %v2902_v47 = vpack.c.bf16 %v509_v41, %v508_v42  ;;  %v480_v48 = vadd.f32 %v479_v45, %v351_v37  ;;  %v944_v37 = vpop.permute.xlu1 %943 }
 0x1cc   :  { %v511_v50 = vmax.f32 %v485_v44, 0.0  ;;  %v949_v40 = vpop.permute.xlu0 %948 }
 0x1cd   :  { %v510_v51 = vmax.f32 %v480_v48, 0.0  ;;  %v2701_v52 = vpop.f32.mrb[4].mxu1  ;;  %2903 = vmatprep.subr.bf16.mxu0 %v2902_v47  ;;  %v976_v48 = vmul.f32 %v3428_v34, %v939_v38  ;;  %v2439_v38 = vld [vmem:[%s3754_s6 + $0x50] sm:$0xff] }
 0x1ce   :  { %v495_v53 = vadd.f32 %v2701_v52, %v366_v46  ;;  %v489_v54 = vpop.f32.mrb[5].mxu1  ;;  %2905 = vmatpush3.bf16.msra.mxu0 %v2902_v47  ;;  %v977_v47 = vmul.f32 %v3428_v34, %v944_v37  ;;  %v2438_v37 = vld [vmem:[%s3754_s6 + $0x48] sm:$0xff] }
 0x1cf   :  { %v2906_v55 = vpack.c.bf16 %v511_v50, %v510_v51  ;;  %v490_v56 = vadd.f32 %v489_v54, %v361_v49  ;;  %v954_v39 = vpop.permute.xlu1 %953 }
 0x1d0   :  { %v513_v57 = vmax.f32 %v495_v53, 0.0  ;;  %v1128_v42 = vpop.permute.xlu0 %1127  ;;  %v979_v54 = vmul.f32 %v3428_v34, %v954_v39  ;;  %v2440_v39 = vld [vmem:[%s3754_s6 + $0x58] sm:$0xff] }
 0x1d1   :  { %v512_v59 = vmax.f32 %v490_v56, 0.0  ;;  %v2704_v60 = vpop.f32.mrb[6].mxu1  ;;  %2907 = vmatprep.subr.bf16.mxu0 %v2906_v55 }
 0x1d2   :  { %v505_v62 = vadd.f32 %v2704_v60, %v376_v58  ;;  %v499_v63 = vpop.f32.mrb[7].mxu1  ;;  %2909 = vmatpush3.bf16.msra.mxu0 %v2906_v55 }
 0x1d3   :  { %v2910_v1 = vpack.c.bf16 %v513_v57, %v512_v59  ;;  %v500_v2 = vadd.f32 %v499_v63, %v371_v61  ;;  %v1133_v41 = vpop.permute.xlu1 %1132  ;;  %v978_v57 = vmul.f32 %v3428_v34, %v949_v40  ;;  %v2441_v40 = vld [vmem:[%s3754_s6 + $0x60] sm:$0xff] }
 0x1d4   :  { %v515_v3 = vmax.f32 %v505_v62, 0.0  ;;  %v959_v44 = vpop.permute.xlu0 %958 }
 0x1d5   :  { %v514_v4 = vmax.f32 %v500_v2, 0.0  ;;  %2911 = vmatprep.subr.bf16.mxu0 %v2910_v1 }
 0x1d6   :  { %2913 = vmatpush3.bf16.msra.mxu0 %v2910_v1 }
 0x1d7   :  { %v2914_v5 = vpack.c.bf16 %v515_v3, %v514_v4  ;;  %v964_v43 = vpop.permute.xlu1 %963  ;;  %v980_v4 = vmul.f32 %v3428_v34, %v959_v44  ;;  %v2461_v44 = vld [vmem:[%s3756_s8 + $0x10] sm:$0xff] }
 0x1d8   :  { %v1138_v46 = vpop.permute.xlu0 %1137  ;;  %v981_v2 = vmul.f32 %v3428_v34, %v964_v43  ;;  %v2444_v43 = vld [vmem:[%s3754_s6 + $0x78] sm:$0xff] }
 0x1d9   :  { %2915 = vmatprep.subr.bf16.mxu0 %v2914_v5 }
 0x1da   :  { %2917 = vmatpush3.bf16.msra.mxu0 %v2914_v5 }
 0x1db   :  { %2724 = vmatprep.subr.mxu0 %v3060_v7  ;;  %v1143_v45 = vpop.permute.xlu1 %1142 }
 0x1dc   :  { %v969_v55 = vpop.permute.xlu0 %968 }
 0x1dd   :  { %2722 = vmatmul.mubr.msk.f32.vlgmr.msra.gmra.mrb[8].mxu0 %vm378_vm2, %v517_v6 }
 0x1de   :  { %2726 = vmatprep.mubr.msk.f32.mxu0 %vm3061_vm3, %v3060_v7 }
 0x1df   :  { %v974_v52 = vpop.permute.xlu1 %973 }
 0x1e3   :  { %v1153_v5 = vpop.permute.xlu1 %1152 }
 0x2b0   :  { %v2723_v9 = vpop.f32.mrb[8].mxu0 }
 0x2b1   :  { %v608_v10 = vadd.f32 %v2723_v9, %v528_v8  ;;  %v602_v11 = vpop.f32.mrb[9].mxu0 }
 0x2b2   :  { %v603_v17 = vadd.f32 %v602_v11, %v523_v16  ;;  %v983_v16 = vmul.f32 %v3428_v34, %v974_v52 }
 0x2b3   :  { %2999 = vtanh.f32 %v608_v10  ;;  %v1148_v10 = vpop.permute.xlu0 %1147 }
 0x2bd   :  { %v3000_v12 = vpop.eup %2999 }
 0x2be   :  { %v612_v13 = vmul.f32 1.442695, %v3000_v12 }
 0x2c0   :  { %3001 = vpow2.f32 %v612_v13 }
 0x2ca   :  { %v3002_v15 = vpop.eup %3001 }
 0x2cb   :  { %v614_v18 = vmul.f32 %v3002_v15, %v52_v14 }
 0x2cd   :  { %v615_v19 = vadd.f32 %v614_v18, %v603_v17  ;;  %v982_v18 = vmul.f32 %v3428_v34, %v969_v55 }
 0x2cf   :  { %2725 = vmatpush3.msk.msra.mxu0 %vm149_vm0, %v615_v19 }
 0x2d0   :  { %2727 = vmatmul.mubr.msk.f32.vlgmr.msra.gmra.mrb[10].mxu0 %vm124_vm1, %v617_v20  ;;  %2729 = vmatprep.subr.mxu0 %v3060_v7 }
 0x2d1   :  { %2730 = vmatpush3.msk.msra.mxu0 %vm149_vm0, %v3149_v0  ;;  %2731 = vmatprep.mubr.msk.f32.mxu0 %vm3061_vm3, %v3060_v7 }
 0x2d2   :  { %2734 = vmatprep.subr.mxu0 %v3060_v7 }
 0x2d8   :  { %2732 = vmatmul.mubr.msk.f32.vlgmr.msra.gmra.mrb[10].mxu0 %vm124_vm1, %v616_v21 }
 0x2d9   :  { %2735 = vmatpush3.msk.msra.mxu0 %vm149_vm0, %v615_v19  ;;  %2736 = vmatprep.mubr.msk.f32.mxu0 %vm3061_vm3, %v3060_v7 }
 0x2da   :  { %2739 = vmatprep.subr.mxu0 %v3060_v7 }
 0x2dc   :  { %2737 = vmatmul.mubr.msk.f32.vlgmr.msra.gmra.mrb[12].mxu0 %vm124_vm1, %v768_v22 }
 0x2dd   :  { %2740 = vmatpush3.msk.msra.mxu0 %vm149_vm0, %v3149_v0  ;;  %2741 = vmatprep.mubr.msk.f32.mxu0 %vm3061_vm3, %v3060_v7  ;;  %v2405_v0 = vld [vmem:[%s3751_s3 + $0x48] sm:$0xff] }
 0x2e4   :  { %2742 = vmatmul.mubr.msk.f32.vlgmr.msra.gmra.mrb[12].mxu0 %vm124_vm1, %v767_v23 }
 0x2e5   :  { %2746 = vmatprep.mubr.msk.f32.mxu0 %vm124_vm1, %v2404_v24 }
 0x3ab   :  { %v3515_v25 = vpop.f32.mrb[10].mxu0 }
 0x3ac   :  { %916 = vst.msk [vmem:[#allocation2] sm:$0xf] %vm915_vm4, %v3515_v25  ;;  %v2733_v26 = vpop.f32.mrb[11].mxu0  ;;  %2744 = vmatprep.subr.msk.mxu0 %vm149_vm0, %v3515_v25 }
 0x3ad   :  { %2745 = vmatpush3.msk.msra.mxu0 %vm149_vm0, %v3515_v25 }
 0x3ae   :  { %2747 = vmatmul.mubr.msk.f32.vlgmr.msra.gmra.mrb[14].mxu0 %vm124_vm1, %v2405_v0  ;;  %v1163_v0 = vpop.permute.xlu1 %1162 }
 0x3af   :  { %2749 = vmatprep.mubr.msk.f32.mxu0 %vm124_vm1, %v2406_v27 }
 0x3b2   :  { %2750 = vmatmul.mubr.msk.f32.gmra.mrb[16].mxu0 %vm124_vm1, %v2407_v28  ;;  %v1158_v28 = vpop.permute.xlu0 %1157 }
 0x3b3   :  { %2752 = vmatprep.mubr.msk.f32.mxu0 %vm124_vm1, %v2408_v29 }
 0x3b6   :  { %2753 = vmatmul.mubr.msk.f32.gmra.mrb[18].mxu0 %vm124_vm1, %v2409_v30 }
 0x3b7   :  { %2755 = vmatprep.mubr.msk.f32.mxu0 %vm124_vm1, %v2410_v31  ;;  %v3550_v33 = vpop.f32.mrb[12].mxu0 }
 0x3b8   :  { %917 = vst.msk [vmem:[#allocation2 + $0x4] sm:$0xf] %vm915_vm4, %v3550_v33  ;;  %v2743_v35 = vpop.f32.mrb[13].mxu0 }
 0x3ba   :  { %2756 = vmatmul.mubr.msk.f32.gmra.mrb[20].mxu0 %vm124_vm1, %v2411_v32 }
 0x3bb   :  { %2802 = vmatprep.mubr.msk.f32.mxu0 %vm378_vm2, %v2461_v44 }
 0x481   :  { %v2748_v49 = vpop.f32.mrb[14].mxu0 }
 0x482   :  { %v1083_v50 = vadd.f32 %v2748_v49, %v977_v47  ;;  %v1077_v51 = vpop.f32.mrb[15].mxu0 }
 0x483   :  { %v1078_v53 = vadd.f32 %v1077_v51, %v976_v48 }
 0x484   :  { %v1166_v56 = vadd.f32 %v1133_v41, %v1083_v50  ;;  %v2442_v41 = vld [vmem:[%s3754_s6 + $0x68] sm:$0xff] }
 0x485   :  { %v1165_v58 = vadd.f32 %v1128_v42, %v1078_v53  ;;  %v2751_v59 = vpop.f32.mrb[16].mxu0  ;;  %v2443_v42 = vld [vmem:[%s3754_s6 + $0x70] sm:$0xff] }
 0x486   :  { %v1174_v60 = vmax.f32 %v1166_v56, 0.0  ;;  %v1093_v61 = vadd.f32 %v2751_v59, %v979_v54  ;;  %v1087_v62 = vpop.f32.mrb[17].mxu0 }
 0x487   :  { %v1173_v63 = vmax.f32 %v1165_v58, 0.0  ;;  %v1088_v1 = vadd.f32 %v1087_v62, %v978_v57 }
 0x488   :  { %v1168_v3 = vadd.f32 %v1143_v45, %v1093_v61  ;;  %v1207_v45 = vpop.permute.xlu1 %1206 }
 0x489   :  { %v1167_v6 = vadd.f32 %v1138_v46, %v1088_v1  ;;  %v2754_v8 = vpop.f32.mrb[18].mxu0  ;;  %v2918_v9 = vpack.c.bf16 %v1174_v60, %v1173_v63  ;;  %v1202_v46 = vpop.permute.xlu0 %1201 }
 0x48a   :  { %v1176_v11 = vmax.f32 %v1168_v3, 0.0  ;;  %v1103_v12 = vadd.f32 %v2754_v8, %v981_v2  ;;  %v1097_v13 = vpop.f32.mrb[19].mxu0 }
 0x48b   :  { %v1175_v14 = vmax.f32 %v1167_v6, 0.0  ;;  %v1098_v15 = vadd.f32 %v1097_v13, %v980_v4  ;;  %2919 = vmatprep.subr.bf16.mxu1 %v2918_v9 }
 0x48c   :  { %v1170_v17 = vadd.f32 %v1153_v5, %v1103_v12  ;;  %2921 = vmatpush3.bf16.msra.mxu1 %v2918_v9  ;;  %v1217_v47 = vpop.permute.xlu1 %1216 }
 0x48d   :  { %v1169_v19 = vadd.f32 %v1148_v10, %v1098_v15  ;;  %v2757_v20 = vpop.f32.mrb[20].mxu0  ;;  %v2922_v21 = vpack.c.bf16 %v1176_v11, %v1175_v14  ;;  %v1212_v49 = vpop.permute.xlu0 %1211 }
 0x48e   :  { %v1178_v22 = vmax.f32 %v1170_v17, 0.0  ;;  %v1113_v23 = vadd.f32 %v2757_v20, %v983_v16  ;;  %v1107_v24 = vpop.f32.mrb[21].mxu0 }
 0x48f   :  { %v1177_v26 = vmax.f32 %v1169_v19, 0.0  ;;  %v1108_v27 = vadd.f32 %v1107_v24, %v982_v18  ;;  %2923 = vmatprep.subr.bf16.mxu1 %v2922_v21  ;;  %v2462_v19 = vld [vmem:[%s3756_s8 + $0x18] sm:$0xff] }
 0x490   :  { %v1172_v29 = vadd.f32 %v1163_v0, %v1113_v23  ;;  %2925 = vmatpush3.bf16.msra.mxu1 %v2922_v21  ;;  %v1227_v58 = vpop.permute.xlu1 %1226 }
 0x491   :  { %v1171_v30 = vadd.f32 %v1158_v28, %v1108_v27  ;;  %v2926_v31 = vpack.c.bf16 %v1178_v22, %v1177_v26  ;;  %v1222_v61 = vpop.permute.xlu0 %1221 }
 0x492   :  { %v1180_v32 = vmax.f32 %v1172_v29, 0.0 }
 0x493   :  { %v1179_v35 = vmax.f32 %v1171_v30, 0.0  ;;  %2927 = vmatprep.subr.bf16.mxu1 %v2926_v31 }
 0x494   :  { %2929 = vmatpush3.bf16.msra.mxu1 %v2926_v31  ;;  %v1237_v8 = vpop.permute.xlu1 %1236  ;;  %v2468_v31 = vld [vmem:[%s3759_s11 + $0x4] sm:$0xf] }
 0x495   :  { %v2930_v36 = vpack.c.bf16 %v1180_v32, %v1179_v35  ;;  %v1232_v11 = vpop.permute.xlu0 %1231  ;;  %v2474_v32 = vld [vmem:[%s3761_s13 + $0x4] sm:$0xf] }
 0x496   :  { %v2479_v35 = vld [vmem:[%s3751_s3 + $0x80] sm:$0xff] }
 0x497   :  { %2931 = vmatprep.subr.bf16.mxu1 %v2930_v36 }
 0x498   :  { %2933 = vmatpush3.bf16.msra.mxu1 %v2930_v36  ;;  %v1385_v27 = vpop.permute.xlu1 %1384 }
 0x499   :  { %v1390_v20 = vpop.permute.xlu0 %1389 }
 0x49b   :  { %2775 = vmatmul.mubr.msk.f32.vlgmr.msra.gmra.mrb[8].mxu1 %vm378_vm2, %v2438_v37  ;;  %v2480_v37 = vld [vmem:[%s3751_s3 + $0x88] sm:$0xff] }
 0x49c   :  { %2777 = vmatprep.mubr.msk.f32.mxu1 %vm378_vm2, %v2439_v38  ;;  %v1810_v44 = vpop.permute.xlu1 %1809 }
 0x49f   :  { %2778 = vmatmul.mubr.msk.f32.gmra.mrb[10].mxu1 %vm378_vm2, %v2440_v39  ;;  %v2483_v39 = vld [vmem:[%s3751_s3 + $0xa0] sm:$0xff] }
 0x4a0   :  { %2780 = vmatprep.mubr.msk.f32.mxu1 %vm378_vm2, %v2441_v40  ;;  %v2484_v40 = vld [vmem:[%s3751_s3 + $0xa8] sm:$0xff] }
 0x4a3   :  { %2781 = vmatmul.mubr.msk.f32.gmra.mrb[12].mxu1 %vm378_vm2, %v2442_v41  ;;  %v2485_v41 = vld [vmem:[%s3751_s3 + $0xb0] sm:$0xff] }
 0x4a4   :  { %2783 = vmatprep.mubr.msk.f32.mxu1 %vm378_vm2, %v2443_v42  ;;  %v2486_v42 = vld [vmem:[%s3751_s3 + $0xb8] sm:$0xff] }
 0x4a7   :  { %2784 = vmatmul.mubr.msk.f32.gmra.mrb[14].mxu1 %vm378_vm2, %v2444_v43  ;;  %v2512_v43 = vld [vmem:[%s3754_s6 + $0x80] sm:$0xff] }
 0x4a8   :  { %2827 = vmatprep.mubr.msk.f32.mxu1 %vm124_vm1, %v2479_v35 }
 0x56e   :  { %v2776_v48 = vpop.f32.mrb[8].mxu1 }
 0x56f   :  { %v1335_v50 = vadd.f32 %v2776_v48, %v1207_v45  ;;  %v1329_v51 = vpop.f32.mrb[9].mxu1  ;;  %v1805_v45 = vpop.permute.xlu0 %1804 }
 0x570   :  { %v1330_v52 = vadd.f32 %v1329_v51, %v1202_v46  ;;  %v1820_v46 = vpop.permute.xlu1 %1819 }
 0x571   :  { %v1369_v53 = vmax.f32 %v1335_v50, 0.0 }
 0x572   :  { %v1368_v54 = vmax.f32 %v1330_v52, 0.0  ;;  %v2779_v55 = vpop.f32.mrb[10].mxu1 }
 0x573   :  { %v1345_v56 = vadd.f32 %v2779_v55, %v1217_v47  ;;  %v1339_v57 = vpop.f32.mrb[11].mxu1  ;;  %v1815_v47 = vpop.permute.xlu0 %1814  ;;  %v1842_v55 = vmul.f32 %v3428_v34, %v1805_v45  ;;  %v2518_v45 = vld [vmem:[%s3754_s6 + $0xb0] sm:$0xff] }
 0x574   :  { %v2934_v59 = vpack.c.bf16 %v1369_v53, %v1368_v54  ;;  %v1340_v60 = vadd.f32 %v1339_v57, %v1212_v49  ;;  %v1999_v48 = vpop.permute.xlu1 %1998  ;;  %v1843_v54 = vmul.f32 %v3428_v34, %v1810_v44  ;;  %v2517_v44 = vld [vmem:[%s3754_s6 + $0xa8] sm:$0xff] }
 0x575   :  { %v1371_v62 = vmax.f32 %v1345_v56, 0.0 }
 0x576   :  { %v1370_v63 = vmax.f32 %v1340_v60, 0.0  ;;  %v2782_v1 = vpop.f32.mrb[12].mxu1  ;;  %2935 = vmatprep.subr.bf16.mxu0 %v2934_v59 }
 0x577   :  { %v1355_v2 = vadd.f32 %v2782_v1, %v1227_v58  ;;  %v1349_v3 = vpop.f32.mrb[13].mxu1  ;;  %2937 = vmatpush3.bf16.msra.mxu0 %v2934_v59  ;;  %v1994_v49 = vpop.permute.xlu0 %1993  ;;  %v1844_v1 = vmul.f32 %v3428_v34, %v1815_v47  ;;  %v2536_v47 = vld [vmem:[%s3756_s8 + $0x20] sm:$0xff] }
 0x578   :  { %v2938_v4 = vpack.c.bf16 %v1371_v62, %v1370_v63  ;;  %v1350_v5 = vadd.f32 %v1349_v3, %v1222_v61  ;;  %v1830_v50 = vpop.permute.xlu1 %1829  ;;  %v1845_v61 = vmul.f32 %v3428_v34, %v1820_v46  ;;  %v2519_v46 = vld [vmem:[%s3754_s6 + $0xb8] sm:$0xff] }
 0x579   :  { %v1373_v6 = vmax.f32 %v1355_v2, 0.0 }
 0x57a   :  { %v1372_v9 = vmax.f32 %v1350_v5, 0.0  ;;  %v2785_v10 = vpop.f32.mrb[14].mxu1  ;;  %2939 = vmatprep.subr.bf16.mxu0 %v2938_v4 }
 0x57b   :  { %v1365_v12 = vadd.f32 %v2785_v10, %v1237_v8  ;;  %v1359_v13 = vpop.f32.mrb[15].mxu1  ;;  %2941 = vmatpush3.bf16.msra.mxu0 %v2938_v4  ;;  %v1825_v51 = vpop.permute.xlu0 %1824  ;;  %v1847_v10 = vmul.f32 %v3428_v34, %v1830_v50 }
 0x57c   :  { %v2942_v14 = vpack.c.bf16 %v1373_v6, %v1372_v9  ;;  %v1360_v15 = vadd.f32 %v1359_v13, %v1232_v11  ;;  %v2009_v52 = vpop.permute.xlu1 %2008 }
 0x57d   :  { %v1375_v16 = vmax.f32 %v1365_v12, 0.0  ;;  %v1846_v12 = vmul.f32 %v3428_v34, %v1825_v51 }
 0x57e   :  { %v1374_v17 = vmax.f32 %v1360_v15, 0.0  ;;  %2943 = vmatprep.subr.bf16.mxu0 %v2942_v14 }
 0x57f   :  { %2945 = vmatpush3.bf16.msra.mxu0 %v2942_v14  ;;  %v2004_v53 = vpop.permute.xlu0 %2003 }
 0x580   :  { %v2946_v18 = vpack.c.bf16 %v1375_v16, %v1374_v17  ;;  %v1840_v59 = vpop.permute.xlu1 %1839 }
 0x582   :  { %2947 = vmatprep.subr.bf16.mxu0 %v2946_v18 }
 0x583   :  { %2949 = vmatpush3.bf16.msra.mxu0 %v2946_v18  ;;  %v1835_v62 = vpop.permute.xlu0 %1834 }
 0x584   :  { %2805 = vmatprep.subr.mxu0 %v3060_v7  ;;  %v2019_v13 = vpop.permute.xlu1 %2018 }
 0x586   :  { %2803 = vmatmul.mubr.msk.f32.vlgmr.msra.gmra.mrb[22].mxu0 %vm378_vm2, %v2462_v19 }
 0x587   :  { %2807 = vmatprep.mubr.msk.f32.mxu0 %vm3061_vm3, %v3060_v7  ;;  %v2014_v17 = vpop.permute.xlu0 %2013 }
 0x659   :  { %v2804_v21 = vpop.f32.mrb[22].mxu0 }
 0x65a   :  { %v1470_v22 = vadd.f32 %v2804_v21, %v1390_v20  ;;  %v1464_v23 = vpop.f32.mrb[23].mxu0 }
 0x65b   :  { %v1465_v28 = vadd.f32 %v1464_v23, %v1385_v27  ;;  %v1849_v23 = vmul.f32 %v3428_v34, %v1840_v59 }
 0x65c   :  { %3003 = vtanh.f32 %v1470_v22 }
 0x666   :  { %v3004_v24 = vpop.eup %3003 }
 0x667   :  { %v1474_v0 = vmul.f32 1.442695, %v3004_v24 }
 0x669   :  { %3005 = vpow2.f32 %v1474_v0  ;;  %v1848_v0 = vmul.f32 %v3428_v34, %v1835_v62 }
 0x673   :  { %v3006_v26 = vpop.eup %3005 }
 0x674   :  { %v1476_v29 = vmul.f32 %v3006_v26, %v3550_v33  ;;  %v2467_v33 = vld [vmem:[%s3758_s10 + $0x4] sm:$0xf] }
 0x676   :  { %v1477_v30 = vadd.f32 %v1476_v29, %v1465_v28 }
 0x678   :  { %2806 = vmatpush3.msk.msra.mxu0 %vm149_vm0, %v1477_v30 }
 0x679   :  { %2808 = vmatmul.mubr.msk.f32.vlgmr.msra.gmra.mrb[24].mxu0 %vm124_vm1, %v2468_v31  ;;  %2810 = vmatprep.subr.mxu0 %v3060_v7 }
 0x67a   :  { %2811 = vmatpush3.msk.msra.mxu0 %vm149_vm0, %v3515_v25  ;;  %2812 = vmatprep.mubr.msk.f32.mxu0 %vm3061_vm3, %v3060_v7 }
 0x67b   :  { %2815 = vmatprep.subr.mxu0 %v3060_v7 }
 0x681   :  { %2813 = vmatmul.mubr.msk.f32.vlgmr.msra.gmra.mrb[24].mxu0 %vm124_vm1, %v2467_v33  ;;  %v2029_v33 = vpop.permute.xlu1 %2028 }
 0x682   :  { %2816 = vmatpush3.msk.msra.mxu0 %vm149_vm0, %v1477_v30  ;;  %2817 = vmatprep.mubr.msk.f32.mxu0 %vm3061_vm3, %v3060_v7 }
 0x683   :  { %2820 = vmatprep.subr.mxu0 %v3060_v7 }
 0x685   :  { %2818 = vmatmul.mubr.msk.f32.vlgmr.msra.gmra.mrb[26].mxu0 %vm124_vm1, %v2474_v32 }
 0x686   :  { %2821 = vmatpush3.msk.msra.mxu0 %vm149_vm0, %v3515_v25  ;;  %2822 = vmatprep.mubr.msk.f32.mxu0 %vm3061_vm3, %v3060_v7  ;;  %v2481_v7 = vld [vmem:[%s3751_s3 + $0x90] sm:$0xff]  ;;  %v2482_v25 = vld [vmem:[%s3751_s3 + $0x98] sm:$0xff] }
 0x754   :  { %v1627_v36 = vpop.f32.mrb[24].mxu0 }
 0x755   :  { %1782 = vst.msk [vmem:[#allocation2 + $0x8] sm:$0xf] %vm915_vm4, %v1627_v36  ;;  %2344 = vst.msk [vmem:[#allocation4] sm:$0xf] %vm915_vm4, %v1627_v36  ;;  %v2814_v38 = vpop.f32.mrb[25].mxu0  ;;  %2825 = vmatprep.subr.msk.mxu1 %vm149_vm0, %v1627_v36 }
 0x756   :  { %2826 = vmatpush3.msk.msra.mxu1 %vm149_vm0, %v1627_v36  ;;  %v2024_v36 = vpop.permute.xlu0 %2023 }
 0x757   :  { %2828 = vmatmul.mubr.msk.f32.vlgmr.msra.gmra.mrb[16].mxu1 %vm124_vm1, %v2480_v37 }
 0x758   :  { %2830 = vmatprep.mubr.msk.f32.mxu1 %vm124_vm1, %v2481_v7 }
 0x75a   :  { %v2068_v50 = vpop.permute.xlu0 %2067 }
 0x75b   :  { %2831 = vmatmul.mubr.msk.f32.gmra.mrb[18].mxu1 %vm124_vm1, %v2482_v25 }
 0x75c   :  { %2833 = vmatprep.mubr.msk.f32.mxu1 %vm124_vm1, %v2483_v39 }
 0x75f   :  { %2834 = vmatmul.mubr.msk.f32.gmra.mrb[20].mxu1 %vm124_vm1, %v2484_v40  ;;  %v2513_v40 = vld [vmem:[%s3754_s6 + $0x88] sm:$0xff] }
 0x760   :  { %2836 = vmatprep.mubr.msk.f32.mxu1 %vm124_vm1, %v2485_v41  ;;  %v2514_v41 = vld [vmem:[%s3754_s6 + $0x90] sm:$0xff] }
 0x763   :  { %2837 = vmatmul.mubr.msk.f32.gmra.mrb[22].mxu1 %vm124_vm1, %v2486_v42  ;;  %v2515_v42 = vld [vmem:[%s3754_s6 + $0x98] sm:$0xff] }
 0x764   :  { %2855 = vmatprep.mubr.msk.f32.mxu1 %vm378_vm2, %v2512_v43  ;;  %v2516_v43 = vld [vmem:[%s3754_s6 + $0xa0] sm:$0xff] }
 0x82a   :  { %v2829_v56 = vpop.f32.mrb[16].mxu1 }
 0x82b   :  { %v1949_v57 = vadd.f32 %v2829_v56, %v1843_v54  ;;  %v1943_v58 = vpop.f32.mrb[17].mxu1 }
 0x82c   :  { %v1944_v60 = vadd.f32 %v1943_v58, %v1842_v55 }
 0x82d   :  { %v2032_v63 = vadd.f32 %v1999_v48, %v1949_v57  ;;  %v2473_v48 = vld [vmem:[%s3760_s12 + $0x4] sm:$0xf] }
 0x82e   :  { %v2031_v2 = vadd.f32 %v1994_v49, %v1944_v60  ;;  %v2832_v3 = vpop.f32.mrb[18].mxu1  ;;  %2823 = vmatmul.mubr.msk.f32.vlgmr.msra.gmra.mrb[26].mxu0 %vm124_vm1, %v2473_v48  ;;  %v2073_v49 = vpop.permute.xlu1 %2072 }
 0x82f   :  { %v2040_v4 = vmax.f32 %v2032_v63, 0.0  ;;  %v1959_v5 = vadd.f32 %v2832_v3, %v1845_v61  ;;  %v1953_v6 = vpop.f32.mrb[19].mxu1 }
 0x830   :  { %v2039_v8 = vmax.f32 %v2031_v2, 0.0  ;;  %v1954_v9 = vadd.f32 %v1953_v6, %v1844_v1 }
 0x831   :  { %v2034_v11 = vadd.f32 %v2009_v52, %v1959_v5 }
 0x832   :  { %v2033_v14 = vadd.f32 %v2004_v53, %v1954_v9  ;;  %v2835_v15 = vpop.f32.mrb[20].mxu1  ;;  %v2950_v16 = vpack.c.bf16 %v2040_v4, %v2039_v8  ;;  %v2083_v51 = vpop.permute.xlu1 %2082 }
 0x833   :  { %v2042_v18 = vmax.f32 %v2034_v11, 0.0  ;;  %v1969_v19 = vadd.f32 %v2835_v15, %v1847_v10  ;;  %v1963_v20 = vpop.f32.mrb[21].mxu1  ;;  %v2078_v53 = vpop.permute.xlu0 %2077 }
 0x834   :  { %v2041_v21 = vmax.f32 %v2033_v14, 0.0  ;;  %v1964_v22 = vadd.f32 %v1963_v20, %v1846_v12  ;;  %2951 = vmatprep.subr.bf16.mxu1 %v2950_v16 }
 0x835   :  { %v2036_v24 = vadd.f32 %v2019_v13, %v1969_v19  ;;  %2953 = vmatpush3.bf16.msra.mxu1 %v2950_v16 }
 0x836   :  { %v2035_v26 = vadd.f32 %v2014_v17, %v1964_v22  ;;  %v2838_v27 = vpop.f32.mrb[22].mxu1  ;;  %v2954_v28 = vpack.c.bf16 %v2042_v18, %v2041_v21  ;;  %v2093_v62 = vpop.permute.xlu1 %2092 }
 0x837   :  { %v2044_v29 = vmax.f32 %v2036_v24, 0.0  ;;  %v1979_v30 = vadd.f32 %v2838_v27, %v1849_v23  ;;  %v1973_v31 = vpop.f32.mrb[23].mxu1  ;;  %v2088_v2 = vpop.permute.xlu0 %2087  ;;  %v2537_v23 = vld [vmem:[%s3756_s8 + $0x28] sm:$0xff] }
 0x838   :  { %v2043_v32 = vmax.f32 %v2035_v26, 0.0  ;;  %v1974_v35 = vadd.f32 %v1973_v31, %v1848_v0  ;;  %2955 = vmatprep.subr.bf16.mxu1 %v2954_v28 }
 0x839   :  { %v2038_v37 = vadd.f32 %v2029_v33, %v1979_v30  ;;  %2957 = vmatpush3.bf16.msra.mxu1 %v2954_v28 }
 0x83a   :  { %v2037_v38 = vadd.f32 %v2024_v36, %v1974_v35  ;;  %v2958_v7 = vpack.c.bf16 %v2044_v29, %v2043_v32  ;;  %v2103_v12 = vpop.permute.xlu1 %2102 }
 0x83b   :  { %v2046_v25 = vmax.f32 %v2038_v37, 0.0  ;;  %v2098_v15 = vpop.permute.xlu0 %2097 }
 0x83c   :  { %v2045_v39 = vmax.f32 %v2037_v38, 0.0  ;;  %2959 = vmatprep.subr.bf16.mxu1 %v2958_v7 }
 0x83d   :  { %2961 = vmatpush3.bf16.msra.mxu1 %v2958_v7 }
 0x83e   :  { %v2962_v34 = vpack.c.bf16 %v2046_v25, %v2045_v39 }
 0x840   :  { %2963 = vmatprep.subr.bf16.mxu1 %v2962_v34 }
 0x841   :  { %2965 = vmatpush3.bf16.msra.mxu1 %v2962_v34 }
 0x844   :  { %2856 = vmatmul.mubr.msk.f32.vlgmr.msra.gmra.mrb[24].mxu1 %vm378_vm2, %v2513_v40 }
 0x845   :  { %2858 = vmatprep.mubr.msk.f32.mxu1 %vm378_vm2, %v2514_v41 }
 0x848   :  { %2859 = vmatmul.mubr.msk.f32.gmra.mrb[26].mxu1 %vm378_vm2, %v2515_v42 }
 0x849   :  { %2861 = vmatprep.mubr.msk.f32.mxu1 %vm378_vm2, %v2516_v43 }
 0x84c   :  { %2862 = vmatmul.mubr.msk.f32.gmra.mrb[28].mxu1 %vm378_vm2, %v2517_v44 }
 0x84d   :  { %2864 = vmatprep.mubr.msk.f32.mxu1 %vm378_vm2, %v2518_v45 }
 0x850   :  { %2865 = vmatmul.mubr.msk.f32.gmra.mrb[30].mxu1 %vm378_vm2, %v2519_v46 }
 0x851   :  { %2883 = vmatprep.mubr.msk.f32.mxu1 %vm378_vm2, %v2536_v47 }
 0x901   :  { %v1777_v24 = vpop.f32.mrb[26].mxu0 }
 0x902   :  { %1783 = vst.msk [vmem:[#allocation2 + $0xc] sm:$0xf] %vm915_vm4, %v1777_v24  ;;  %v2824_v0 = vpop.f32.mrb[27].mxu0 }
 0x917   :  { %v2857_v52 = vpop.f32.mrb[24].mxu1 }
 0x918   :  { %v2201_v54 = vadd.f32 %v2857_v52, %v2073_v49  ;;  %v2195_v55 = vpop.f32.mrb[25].mxu1 }
 0x919   :  { %v2196_v56 = vadd.f32 %v2195_v55, %v2068_v50 }
 0x91a   :  { %v2235_v57 = vmax.f32 %v2201_v54, 0.0 }
 0x91b   :  { %v2234_v58 = vmax.f32 %v2196_v56, 0.0  ;;  %v2860_v59 = vpop.f32.mrb[26].mxu1 }
 0x91c   :  { %v2211_v60 = vadd.f32 %v2860_v59, %v2083_v51  ;;  %v2205_v61 = vpop.f32.mrb[27].mxu1 }
 0x91d   :  { %v2966_v63 = vpack.c.bf16 %v2235_v57, %v2234_v58  ;;  %v2206_v1 = vadd.f32 %v2205_v61, %v2078_v53 }
 0x91e   :  { %v2237_v3 = vmax.f32 %v2211_v60, 0.0 }
 0x91f   :  { %v2236_v4 = vmax.f32 %v2206_v1, 0.0  ;;  %v2863_v5 = vpop.f32.mrb[28].mxu1  ;;  %2967 = vmatprep.subr.bf16.mxu1 %v2966_v63 }
 0x920   :  { %v2221_v6 = vadd.f32 %v2863_v5, %v2093_v62  ;;  %v2215_v8 = vpop.f32.mrb[29].mxu1  ;;  %2969 = vmatpush3.bf16.msra.mxu1 %v2966_v63 }
 0x921   :  { %v2970_v9 = vpack.c.bf16 %v2237_v3, %v2236_v4  ;;  %v2216_v10 = vadd.f32 %v2215_v8, %v2088_v2 }
 0x922   :  { %v2239_v11 = vmax.f32 %v2221_v6, 0.0 }
 0x923   :  { %v2238_v13 = vmax.f32 %v2216_v10, 0.0  ;;  %v2866_v14 = vpop.f32.mrb[30].mxu1  ;;  %2971 = vmatprep.subr.bf16.mxu1 %v2970_v9 }
 0x924   :  { %v2231_v16 = vadd.f32 %v2866_v14, %v2103_v12  ;;  %v2225_v17 = vpop.f32.mrb[31].mxu1  ;;  %2973 = vmatpush3.bf16.msra.mxu1 %v2970_v9 }
 0x925   :  { %v2974_v18 = vpack.c.bf16 %v2239_v11, %v2238_v13  ;;  %v2226_v19 = vadd.f32 %v2225_v17, %v2098_v15 }
 0x926   :  { %v2241_v20 = vmax.f32 %v2231_v16, 0.0 }
 0x927   :  { %v2240_v21 = vmax.f32 %v2226_v19, 0.0  ;;  %2975 = vmatprep.subr.bf16.mxu1 %v2974_v18 }
 0x928   :  { %2977 = vmatpush3.bf16.msra.mxu1 %v2974_v18 }
 0x929   :  { %v2978_v22 = vpack.c.bf16 %v2241_v20, %v2240_v21 }
 0x92b   :  { %2979 = vmatprep.subr.bf16.mxu1 %v2978_v22 }
 0x92c   :  { %2981 = vmatpush3.bf16.msra.mxu1 %v2978_v22 }
 0x92f   :  { %2884 = vmatmul.mubr.msk.f32.vlgmr.msra.gmra.mrb[32].mxu1 %vm378_vm2, %v2537_v23 }
 0x930   :  { %3022 = shalt.err (!%p3019_p4)
}
 0x931   :  { %s3023_s8 = scalar_lea.hbm %s3762_s14, 256 }
 0x932   :  { %p3024_p5 = scmp.ne.s32.totalorder %s3762_s14, %s3023_s8  ;;  %p3027_p6 = scmp.lt.u32.totalorder %s3023_s8, %s3762_s14 }
 0x934   :  { %p3029_p7 = pnand %p3027_p6, %p3024_p5 }
 0x936   :  { %3032 = shalt.err (!%p3029_p7)
}
 0x937   :  { %s3063_s7 = smov 128   ;;  %s3064_s30 = smov 8   ;;  %v2256_v26 = vpop.permute.xlu0 %2255  ;;  %v2251_v32 = vpop.permute.xlu1 %2250 }
 0x938   :  { %2357 = dma.vmem_to_hbm [thread:$0]  %s2352_s25, 256, %s3762_s14, [#allocation3], %s3063_s7, %s3063_s7, %s3064_s30  }
 0x939   :  { %s3065_s9 = smov [#allocation4]  }
 0x93a   :  { %s2364_s11 = sshll.u32 %s3065_s9, 4  ;;  %s2365_s11 = int_to_ptr.vmem [resolvable:$true] %s2364_s11 }
 0x93b   :  { %s3033_s16 = scalar_lea.vmem %s2365_s11, 128  ;;  %p3038_p9 = scmp.lt.s32.totalorder %s2365_s11, %s2365_s11 }
 0x93c   :  { %p3034_p8 = scmp.ne.s32.totalorder %s2365_s11, %s3033_s16  ;;  %p3039_p10 = scmp.lt.s32.totalorder %s3033_s16, %s3033_s16 }
 0x93e   :  { %p3040_p11 = por %p3039_p10, %p3038_p9 }
 0x940   :  { %p3041_p12 = pnand %p3040_p11, %p3034_p8 }
 0xa02   :  { %v2885_v27 = vpop.f32.mrb[32].mxu1 }
 0xa03   :  { %v2336_v28 = vadd.f32 %v2885_v27, %v2256_v26  ;;  %v2330_v29 = vpop.f32.mrb[33].mxu1 }
 0xa04   :  { %v2331_v35 = vadd.f32 %v2330_v29, %v2251_v32 }
 0xa05   :  { %3007 = vtanh.f32 %v2336_v28 }
 0xa0f   :  { %v3008_v30 = vpop.eup %3007 }
 0xa10   :  { %v2340_v31 = vmul.f32 1.442695, %v3008_v30 }
 0xa12   :  { %3009 = vpow2.f32 %v2340_v31 }
 0xa1c   :  { %v3010_v33 = vpop.eup %3009 }
 0xa1d   :  { %v2342_v36 = vmul.f32 %v3010_v33, %v1777_v24 }
 0xa1f   :  { %v2343_v37 = vadd.f32 %v2342_v36, %v2331_v35 }
 0xa21   :  { %2345 = vst.msk [vmem:[#allocation4 + $0x4] sm:$0xf] %vm915_vm4, %v2343_v37 }
 0xa22   :  { %3044 = shalt.err (!%p3041_p12)
}
 0xa23   :  { %s3045_s17 = scalar_lea.hbm %s3763_s15, 128 }
 0xa24   :  { %p3046_p13 = scmp.ne.s32.totalorder %s3763_s15, %s3045_s17  ;;  %p3049_p0 = scmp.lt.u32.totalorder %s3045_s17, %s3763_s15 }
 0xa26   :  { %p3051_p1 = pnand %p3049_p0, %p3046_p13 }
 0xa28   :  { %3054 = shalt.err (!%p3051_p1)
}
 0xa29   :  { %2367 = dma.vmem_to_hbm [thread:$0]  %s2365_s11, 128, %s3763_s15, [#allocation5]  }
 0xa2a   :  { %3055 = dma.done.wait [#allocation3], 256  }
 0xa2b   :  { %3056 = vsyncadd [#allocation3], 4294967040 }
 0xa2c   :  { %3057 = dma.done.wait [#allocation5], 128  }
 0xa2d   :  { %3058 = vsyncadd [#allocation5], 4294967168 }
 0xa2e   :  { %2374 = vsyncpa [#allocation3], 1 }
 0xa2f   :  { %2375 = vsyncpa [#allocation5], 1 }

</bundles_post_ra>
